<compile_context>
chip_gen: v6e
topology: v6e:2x2x1
jax: 0.10.0
libtpu: 0.0.40
codegen_flags: <defaults>
</compile_context>

<pallas_src>
import functools
import math

import jax
import jax.numpy as jnp
from jax import lax
from jax.experimental import pallas as pl
from jax.experimental.pallas import tpu as pltpu

_INV_SQRT2 = 1.0 / math.sqrt(2.0)
_SQRT_2_OVER_PI = math.sqrt(2.0 / math.pi)


def _round_up(x, m):
    return ((x + m - 1) // m) * m


def _ffn_kernel(x_ref, w1_ref, b1_ref, w2_ref, b2_ref, o_ref, xn_ref, acc_ref,
                *, approx_gelu):
    h_idx = pl.program_id(1)

    # LayerNorm (affine already folded into W1/b1 in the wrapper).  Compute
    # once per row tile (first H slab) and cache as bf16 for all slabs.
    @pl.when(h_idx == 0)
    def _():
        x = x_ref[...].astype(jnp.float32)                 # bf16 tile -> f32
        mean = jnp.mean(x, axis=-1, keepdims=True)
        xc = x - mean
        var = jnp.mean(xc * xc, axis=-1, keepdims=True)
        xn = xc * lax.rsqrt(var + 1e-5)                    # eps matches PyTorch
        xn_ref[...] = xn.astype(jnp.bfloat16)
        acc_ref[...] = jnp.zeros_like(acc_ref)

    # Linear 1 for this H slab: (tm, D) @ (D, th) -> f32, + b1 slab.
    h = jnp.dot(xn_ref[...], w1_ref[...],
                preferred_element_type=jnp.float32) + b1_ref[...]

    if approx_gelu:
        # tanh-approx GELU: the transcendental goes to the EUP slot (otherwise
        # idle), relieving the f32 VALU on v6e/v7x.  Opt-in: differs slightly
        # from torch.nn.GELU()'s default exact-erf semantics.
        h = 0.5 * h * (1.0 + jnp.tanh(_SQRT_2_OVER_PI * (h + 0.044715 * h * h * h)))
    else:
        # Exact (erf-based) GELU — matches torch.nn.GELU default numerics.
        h = 0.5 * h * (1.0 + lax.erf(h * _INV_SQRT2))

    # Partial Linear 2, accumulated across H slabs: (tm, th) @ (th, D).
    acc_ref[...] += jnp.dot(h.astype(jnp.bfloat16), w2_ref[...],
                            preferred_element_type=jnp.float32)

    @pl.when(h_idx == pl.num_programs(1) - 1)
    def _():
        o_ref[...] = (acc_ref[...] + b2_ref[...]).astype(o_ref.dtype)


def _chip_defaults():
    """Generation-specific tile sizes / VMEM limits (perf-review rooflines)."""
    try:
        kind = jax.devices()[0].device_kind.lower()
    except Exception:  # pragma: no cover - defensive
        kind = ""
    if "v5 lite" in kind or "v5e" in kind or "v5litepod" in kind:
        # v5e sits at its ~240 FLOP/B roofline already at tm=256; scoped VMEM
        # default is only 16 MiB so keep an explicit (modest) limit.
        return dict(tm=256, th=512, vmem_limit_bytes=48 * 2**20, min_row_tiles=1)
    if "v7" in kind:
        # ~311 FLOP/B roofline; only 64 MiB VMEM/TC; 2 TCs -> want >=2 row tiles.
        return dict(tm=512, th=512, vmem_limit_bytes=56 * 2**20, min_row_tiles=2)
    if "v6" in kind or "trillium" in kind:
        # Needs ~680 FLOP/B to be MXU-bound; 128 MiB VMEM allows big row tiles.
        return dict(tm=1024, th=1024, vmem_limit_bytes=100 * 2**20, min_row_tiles=1)
    return dict(tm=512, th=512, vmem_limit_bytes=64 * 2**20, min_row_tiles=1)


def _vmem_bytes(tm, th, d, out_itemsize):
    """Rough per-call VMEM footprint (double-buffered pipelined operands)."""
    db = 2
    x_tile = tm * d * 2 * db          # bf16 x row tile
    w1 = d * th * 2 * db              # bf16 W1 slab
    b1 = th * 4 * db
    w2 = th * d * 2 * db              # bf16 W2 slab
    b2 = d * 4 * db
    out = tm * d * out_itemsize * db  # output tile
    xn = tm * d * 2                   # bf16 normalized-row scratch
    acc = tm * d * 4                  # f32 accumulator scratch
    return x_tile + w1 + b1 + w2 + b2 + out + xn + acc


def feed_forward(x, gamma, beta, w1, b1, w2, b2, *, tm=None, th=None,
                 vmem_limit_bytes=None, gelu_approximate=False, out_dtype=None):
    """x: (..., dim). w1: (dim, hidden), w2: (hidden, dim). Returns x's shape."""
    orig_shape = x.shape
    D = orig_shape[-1]
    H = w1.shape[1]
    assert D % 128 == 0, "dim must be a multiple of 128 for lane-dense tiles"
    # TODO(synk): support dim not a multiple of 128 by masking the LayerNorm
    # reduction and padding the feature axis.

    defaults = _chip_defaults()
    tm = defaults["tm"] if tm is None else tm
    th = defaults["th"] if th is None else th
    vmem_limit_bytes = (defaults["vmem_limit_bytes"]
                        if vmem_limit_bytes is None else vmem_limit_bytes)
    min_row_tiles = defaults["min_row_tiles"]
    out_dtype = x.dtype if out_dtype is None else out_dtype
    out_itemsize = jnp.dtype(out_dtype).itemsize

    x2 = x.reshape(-1, D)
    M = x2.shape[0]

    # Row tile: multiple of 16 (bf16 sublane packing); hidden slab: multiple
    # of 256 (matches the 2x256 MXU N dimension on v6e/v7x).
    tm_eff = _round_up(min(tm, _round_up(M, 16)), 16)
    th_eff = _round_up(min(th, _round_up(H, 256)), 256)

    # On multi-TensorCore chips (v7x) keep >=2 row tiles so the "parallel"
    # row axis can be sharded across cores.
    if min_row_tiles > 1 and M >= min_row_tiles * 128:
        tm_eff = min(tm_eff, _round_up((M + min_row_tiles - 1) // min_row_tiles, 16))

    # Shrink tiles if the footprint would exceed the VMEM budget.
    while _vmem_bytes(tm_eff, th_eff, D, out_itemsize) > 0.9 * vmem_limit_bytes:
        if tm_eff > 256:
            tm_eff = _round_up(tm_eff // 2, 16)
        elif th_eff > 256:
            th_eff = _round_up(th_eff // 2, 256)
        else:
            break

    Mp = _round_up(M, tm_eff)
    Hp = _round_up(H, th_eff)

    # Fold the LayerNorm affine into the first linear (mathematically exact):
    #   (xn*gamma + beta) @ W1 + b1 == xn @ (diag(gamma) W1) + (beta @ W1 + b1)
    w1f = gamma.astype(jnp.float32)[:, None] * w1.astype(jnp.float32)
    b1f = beta.astype(jnp.float32) @ w1.astype(jnp.float32) + b1.astype(jnp.float32)
    w2f = w2.astype(jnp.float32)

    # Pad hidden dim; zero W1 columns / zero W2 rows are exact no-ops.
    if Hp != H:
        w1f = jnp.pad(w1f, ((0, 0), (0, Hp - H)))
        b1f = jnp.pad(b1f, (0, Hp - H))
        w2f = jnp.pad(w2f, ((0, Hp - H), (0, 0)))
    # Pad rows; padded (zero) rows survive LN and are sliced off afterwards.
    if Mp != M:
        x2 = jnp.pad(x2, ((0, Mp - M), (0, 0)))

    # bf16 MXU operands and bf16 x DMA; biases stay f32 (added post-accum).
    x2_bf = x2.astype(jnp.bfloat16)
    w1_bf = w1f.astype(jnp.bfloat16)
    w2_bf = w2f.astype(jnp.bfloat16)
    b1_2 = b1f.reshape(1, Hp)
    b2_2 = b2.astype(jnp.float32).reshape(1, D)

    grid = (Mp // tm_eff, Hp // th_eff)

    kernel = functools.partial(_ffn_kernel, approx_gelu=gelu_approximate)

    out = pl.pallas_call(
        kernel,
        out_shape=jax.ShapeDtypeStruct((Mp, D), out_dtype),
        grid_spec=pltpu.PrefetchScalarGridSpec(
            num_scalar_prefetch=0,
            grid=grid,
            in_specs=[
                pl.BlockSpec((tm_eff, D), lambda i, h: (i, 0)),    # x row tile (bf16)
                pl.BlockSpec((D, th_eff), lambda i, h: (0, h)),    # W1 slab
                pl.BlockSpec((1, th_eff), lambda i, h: (0, h)),    # b1 slab
                pl.BlockSpec((th_eff, D), lambda i, h: (h, 0)),    # W2 slab
                pl.BlockSpec((1, D), lambda i, h: (0, 0)),         # b2
            ],
            out_specs=pl.BlockSpec((tm_eff, D), lambda i, h: (i, 0)),
            scratch_shapes=[
                pltpu.VMEM((tm_eff, D), jnp.bfloat16),   # cached normalized rows
                pltpu.VMEM((tm_eff, D), jnp.float32),    # f32 output accumulator
            ],
        ),
        compiler_params=pltpu.CompilerParams(
            dimension_semantics=("parallel", "arbitrary"),
            vmem_limit_bytes=vmem_limit_bytes,
        ),
    )(x2_bf, w1_bf, b1_2, w2_bf, b2_2)

    if Mp != M:
        out = out[:M]
    return out.reshape(orig_shape).astype(out_dtype)


def _reference(x, gamma, beta, w1, b1, w2, b2):
    mean = jnp.mean(x, axis=-1, keepdims=True)
    var = jnp.mean((x - mean) ** 2, axis=-1, keepdims=True)
    xn = (x - mean) * lax.rsqrt(var + 1e-5) * gamma + beta
    h = xn @ w1 + b1
    h = jax.nn.gelu(h, approximate=False)
    return h @ w2 + b2


if __name__ == "__main__":
    # Small but lane-dense shapes (dim/hidden multiples of 128/256).
    batch, seq, dim, hidden = 2, 72, 256, 512

    key = jax.random.PRNGKey(0)
    kx, kw1, kb1, kw2, kb2 = jax.random.split(key, 5)

    x = jax.random.normal(kx, (batch, seq, dim), dtype=jnp.float32)

    # LayerNorm params (PyTorch init: weight=1, bias=0)
    gamma = jnp.ones((dim,), dtype=jnp.float32)
    beta = jnp.zeros((dim,), dtype=jnp.float32)

    # Linear params, uniform init like PyTorch's default bounds
    bound1 = 1.0 / math.sqrt(dim)
    w1 = jax.random.uniform(kw1, (dim, hidden), minval=-bound1, maxval=bound1,
                            dtype=jnp.float32)
    b1 = jax.random.uniform(kb1, (hidden,), minval=-bound1, maxval=bound1,
                            dtype=jnp.float32)

    bound2 = 1.0 / math.sqrt(hidden)
    w2 = jax.random.uniform(kw2, (hidden, dim), minval=-bound2, maxval=bound2,
                            dtype=jnp.float32)
    b2 = jax.random.uniform(kb2, (dim,), minval=-bound2, maxval=bound2,
                            dtype=jnp.float32)

    ref = _reference(x, gamma, beta, w1, b1, w2, b2)

    # 1) Chip-default tiles (perf path).
    out = feed_forward(x, gamma, beta, w1, b1, w2, b2)
    out = jax.block_until_ready(out)
    assert out.shape == x.shape
    # bf16 x / bf16 MXU operands (f32 accumulation): ~1% relative deviation.
    assert jnp.allclose(out, ref, atol=5e-2, rtol=5e-2), "mismatch (default tiles)"

    # 2) Small explicit tiles: exercises row padding (144 -> 192), multiple
    #    row tiles, and multiple accumulated H slabs.
    out_small = feed_forward(x, gamma, beta, w1, b1, w2, b2, tm=64, th=256)
    out_small = jax.block_until_ready(out_small)
    assert jnp.allclose(out_small, ref, atol=5e-2, rtol=5e-2), "mismatch (small tiles)"

    # 3) tanh-approx GELU path (EUP-friendly on v6e/v7x); deviation from the
    #    exact-erf reference is ~1e-3, well within tolerance.
    out_approx = feed_forward(x, gamma, beta, w1, b1, w2, b2,
                              gelu_approximate=True)
    out_approx = jax.block_until_ready(out_approx)
    assert jnp.allclose(out_approx, ref, atol=5e-2, rtol=5e-2), "mismatch (approx gelu)"

    print("KERNEL_OK")
</pallas_src>

<mosaic_0001>
module attributes {stable_mosaic.version = 11 : i64} {
  func.func @_ffn_kernel(%arg0: i32, %arg1: i32, %arg2: memref<144x256xbf16, #tpu.memory_space<vmem>>, %arg3: memref<256x512xbf16, #tpu.memory_space<vmem>>, %arg4: memref<1x512xf32, #tpu.memory_space<vmem>>, %arg5: memref<512x256xbf16, #tpu.memory_space<vmem>>, %arg6: memref<1x256xf32, #tpu.memory_space<vmem>>, %arg7: memref<144x256xf32, #tpu.memory_space<vmem>>, %arg8: memref<144x256xbf16, #tpu.memory_space<vmem>>, %arg9: memref<144x256xf32, #tpu.memory_space<vmem>>) attributes {dimension_semantics = [#tpu.dimension_semantics<parallel>, #tpu.dimension_semantics<arbitrary>], iteration_bounds = array<i64: 1, 1>, scalar_prefetch = 0 : i64, scratch_operands = 2 : i64, tpu.core_type = #tpu.core_type<tc>, window_params = [{transform_indices = @transform_0, window_bounds = array<i64: 144, 256>}, {transform_indices = @transform_1, window_bounds = array<i64: 256, 512>}, {transform_indices = @transform_2, window_bounds = array<i64: 1, 512>}, {transform_indices = @transform_3, window_bounds = array<i64: 512, 256>}, {pipeline_mode = #tpu.pipeline_mode<synchronous>, transform_indices = @transform_4, window_bounds = array<i64: 1, 256>}, {transform_indices = @transform_5, window_bounds = array<i64: 144, 256>}]} {
    %c0_i32 = arith.constant 0 : i32
    %0 = arith.cmpi eq, %arg1, %c0_i32 : i32
    %1 = arith.extui %0 : i1 to i32
    %c0_i32_0 = arith.constant 0 : i32
    %2 = arith.cmpi ne, %1, %c0_i32_0 : i32
    scf.if %2 {
      %c0_18 = arith.constant 0 : index
      %c0_19 = arith.constant 0 : index
      %26 = vector.load %arg2[%c0_18, %c0_19] : memref<144x256xbf16, #tpu.memory_space<vmem>>, vector<144x256xbf16>
      %27 = arith.extf %26 : vector<144x256xbf16> to vector<144x256xf32>
      %cst_20 = arith.constant dense<0.000000e+00> : vector<144xf32>
      %28 = vector.multi_reduction <add>, %27, %cst_20 [1] : vector<144x256xf32> to vector<144xf32>
      %29 = vector.shape_cast %28 : vector<144xf32> to vector<144x1xf32>
      %cst_21 = arith.constant 2.560000e+02 : f32
      %30 = vector.broadcast %cst_21 : f32 to vector<144x1xf32>
      %31 = arith.divf %29, %30 : vector<144x1xf32>
      %32 = vector.broadcast %31 : vector<144x1xf32> to vector<144x256xf32>
      %33 = arith.subf %27, %32 : vector<144x256xf32>
      %34 = arith.mulf %33, %33 : vector<144x256xf32>
      %cst_22 = arith.constant dense<0.000000e+00> : vector<144xf32>
      %35 = vector.multi_reduction <add>, %34, %cst_22 [1] : vector<144x256xf32> to vector<144xf32>
      %36 = vector.shape_cast %35 : vector<144xf32> to vector<144x1xf32>
      %cst_23 = arith.constant 2.560000e+02 : f32
      %37 = vector.broadcast %cst_23 : f32 to vector<144x1xf32>
      %38 = arith.divf %36, %37 : vector<144x1xf32>
      %cst_24 = arith.constant 9.99999974E-6 : f32
      %39 = vector.broadcast %cst_24 : f32 to vector<144x1xf32>
      %40 = arith.addf %38, %39 : vector<144x1xf32>
      %41 = math.rsqrt %40 : vector<144x1xf32>
      %42 = vector.broadcast %41 : vector<144x1xf32> to vector<144x256xf32>
      %43 = arith.mulf %33, %42 : vector<144x256xf32>
      %44 = arith.truncf %43 : vector<144x256xf32> to vector<144x256xbf16>
      %c0_25 = arith.constant 0 : index
      %c0_26 = arith.constant 0 : index
      %45 = vector.load %arg8[%c0_25, %c0_26] : memref<144x256xbf16, #tpu.memory_space<vmem>>, vector<144x256xbf16>
      tpu.vector_store %arg8[%c0_25, %c0_26], %44 {strides = array<i32>} : memref<144x256xbf16, #tpu.memory_space<vmem>>, vector<144x256xbf16>,
      %cst_27 = arith.constant 0.000000e+00 : f32
      %46 = vector.broadcast %cst_27 : f32 to vector<144x256xf32>
      %c0_28 = arith.constant 0 : index
      %c0_29 = arith.constant 0 : index
      %47 = vector.load %arg9[%c0_28, %c0_29] : memref<144x256xf32, #tpu.memory_space<vmem>>, vector<144x256xf32>
      tpu.vector_store %arg9[%c0_28, %c0_29], %46 {strides = array<i32>} : memref<144x256xf32, #tpu.memory_space<vmem>>, vector<144x256xf32>,
    } else {
    }
    %c0 = arith.constant 0 : index
    %c0_1 = arith.constant 0 : index
    %3 = vector.load %arg8[%c0, %c0_1] : memref<144x256xbf16, #tpu.memory_space<vmem>>, vector<144x256xbf16>
    %c0_2 = arith.constant 0 : index
    %c0_3 = arith.constant 0 : index
    %4 = vector.load %arg3[%c0_2, %c0_3] : memref<256x512xbf16, #tpu.memory_space<vmem>>, vector<256x512xbf16>
    %cst = arith.constant dense<0.000000e+00> : vector<144x512xf32>
    %5 = tpu.matmul %3, %4, %cst {dimension_numbers = #tpu.dot_dimension_numbers<[1], [0], [0], [1], [0, 0, 1, 1], [], []>} : vector<144x256xbf16>, vector<256x512xbf16>, vector<144x512xf32> -> vector<144x512xf32>
    %c0_4 = arith.constant 0 : index
    %c0_5 = arith.constant 0 : index
    %6 = vector.load %arg4[%c0_4, %c0_5] : memref<1x512xf32, #tpu.memory_space<vmem>>, vector<1x512xf32>
    %7 = vector.broadcast %6 : vector<1x512xf32> to vector<144x512xf32>
    %8 = arith.addf %5, %7 : vector<144x512xf32>
    %cst_6 = arith.constant 5.000000e-01 : f32
    %9 = vector.broadcast %cst_6 : f32 to vector<144x512xf32>
    %10 = arith.mulf %9, %8 : vector<144x512xf32>
    %cst_7 = arith.constant 0.707106769 : f32
    %11 = vector.broadcast %cst_7 : f32 to vector<144x512xf32>
    %12 = arith.mulf %8, %11 : vector<144x512xf32>
    %13 = math.erf %12 : vector<144x512xf32>
    %cst_8 = arith.constant 1.000000e+00 : f32
    %14 = vector.broadcast %cst_8 : f32 to vector<144x512xf32>
    %15 = arith.addf %14, %13 : vector<144x512xf32>
    %16 = arith.mulf %10, %15 : vector<144x512xf32>
    %c0_9 = arith.constant 0 : index
    %c0_10 = arith.constant 0 : index
    %17 = vector.load %arg9[%c0_9, %c0_10] : memref<144x256xf32, #tpu.memory_space<vmem>>, vector<144x256xf32>
    %18 = arith.truncf %16 : vector<144x512xf32> to vector<144x512xbf16>
    %c0_11 = arith.constant 0 : index
    %c0_12 = arith.constant 0 : index
    %19 = vector.load %arg5[%c0_11, %c0_12] : memref<512x256xbf16, #tpu.memory_space<vmem>>, vector<512x256xbf16>
    %cst_13 = arith.constant dense<0.000000e+00> : vector<144x256xf32>
    %20 = tpu.matmul %18, %19, %cst_13 {dimension_numbers = #tpu.dot_dimension_numbers<[1], [0], [0], [1], [0, 0, 1, 1], [], []>} : vector<144x512xbf16>, vector<512x256xbf16>, vector<144x256xf32> -> vector<144x256xf32>
    %21 = arith.addf %17, %20 : vector<144x256xf32>
    %c0_14 = arith.constant 0 : index
    %c0_15 = arith.constant 0 : index
    %22 = vector.load %arg9[%c0_14, %c0_15] : memref<144x256xf32, #tpu.memory_space<vmem>>, vector<144x256xf32>
    tpu.vector_store %arg9[%c0_14, %c0_15], %21 {strides = array<i32>} : memref<144x256xf32, #tpu.memory_space<vmem>>, vector<144x256xf32>,
    %c0_i32_16 = arith.constant 0 : i32
    %23 = arith.cmpi eq, %arg1, %c0_i32_16 : i32
    %24 = arith.extui %23 : i1 to i32
    %c0_i32_17 = arith.constant 0 : i32
    %25 = arith.cmpi ne, %24, %c0_i32_17 : i32
    scf.if %25 {
      %c0_18 = arith.constant 0 : index
      %c0_19 = arith.constant 0 : index
      %26 = vector.load %arg9[%c0_18, %c0_19] : memref<144x256xf32, #tpu.memory_space<vmem>>, vector<144x256xf32>
      %c0_20 = arith.constant 0 : index
      %c0_21 = arith.constant 0 : index
      %27 = vector.load %arg6[%c0_20, %c0_21] : memref<1x256xf32, #tpu.memory_space<vmem>>, vector<1x256xf32>
      %28 = vector.broadcast %27 : vector<1x256xf32> to vector<144x256xf32>
      %29 = arith.addf %26, %28 : vector<144x256xf32>
      %c0_22 = arith.constant 0 : index
      %c0_23 = arith.constant 0 : index
      %30 = vector.load %arg7[%c0_22, %c0_23] : memref<144x256xf32, #tpu.memory_space<vmem>>, vector<144x256xf32>
      tpu.vector_store %arg7[%c0_22, %c0_23], %29 {strides = array<i32>} : memref<144x256xf32, #tpu.memory_space<vmem>>, vector<144x256xf32>,
    } else {
    }
    return
  }
  func.func @transform_0(%arg0: i32, %arg1: i32) -> (i32, i32) {
    %c0_i32 = arith.constant 0 : i32
    %c0_i32_0 = arith.constant 0 : i32
    return %arg0, %c0_i32 : i32, i32
  }
  func.func @transform_1(%arg0: i32, %arg1: i32) -> (i32, i32) {
    %c0_i32 = arith.constant 0 : i32
    %c0_i32_0 = arith.constant 0 : i32
    return %c0_i32, %arg1 : i32, i32
  }
  func.func @transform_2(%arg0: i32, %arg1: i32) -> (i32, i32) {
    %c0_i32 = arith.constant 0 : i32
    %c0_i32_0 = arith.constant 0 : i32
    return %c0_i32, %arg1 : i32, i32
  }
  func.func @transform_3(%arg0: i32, %arg1: i32) -> (i32, i32) {
    %c0_i32 = arith.constant 0 : i32
    %c0_i32_0 = arith.constant 0 : i32
    return %arg1, %c0_i32 : i32, i32
  }
  func.func @transform_4(%arg0: i32, %arg1: i32) -> (i32, i32) {
    %c0_i32 = arith.constant 0 : i32
    %c0_i32_0 = arith.constant 0 : i32
    %c0_i32_1 = arith.constant 0 : i32
    return %c0_i32, %c0_i32_0 : i32, i32
  }
  func.func @transform_5(%arg0: i32, %arg1: i32) -> (i32, i32) {
    %c0_i32 = arith.constant 0 : i32
    %c0_i32_0 = arith.constant 0 : i32
    return %arg0, %c0_i32 : i32, i32
  }
}

</mosaic_0001>

<bundles_post_ra>
// kernel: tpu_custom_call.1
= control target key start
LH: loop header
LB: loop body
LE: loop exit
PB: predicated region body
PF: predicated region fallthrough
CT: control target
= control target key end

     0   :  { %10 = vsyncpa [#allocation5], 0  ;;  %s4391_s0 = inlined_call_operand.hbm [shape: bf16[144,256], index: 0, kind: input, shape index: {}]   ;;  %s4392_s1 = inlined_call_operand.hbm [shape: bf16[256,512], index: 1, kind: input, shape index: {}]   ;;  %s4393_s2 = inlined_call_operand.hbm [shape: f32[1,512], index: 2, kind: input, shape index: {}]   ;;  %s4394_s3 = inlined_call_operand.hbm [shape: bf16[512,256], index: 3, kind: input, shape index: {}]   ;;  %s4395_s4 = inlined_call_operand.vmem [shape: f32[1,256], index: 4, kind: input, shape index: {}]   ;;  %s4396_s5 = inlined_call_operand.hbm [shape: f32[144,256], index: 5, kind: output, shape index: {}]  }
   0x1   :  { %11 = vsyncpa [#allocation8], 0 }
   0x2   :  { %12 = vsyncpa [#allocation11], 0 }
   0x3   :  { %13 = vsyncpa [#allocation6], 0  ;;  %s3308_s18 = smov [#allocation7]  }
   0x4   :  { %s31_s19 = sshll.u32 %s3308_s18, 4  ;;  %s32_s19 = int_to_ptr.vmem [resolvable:$true] %s31_s19 }
   0x5   :  { %s3208_s20 = scalar_lea.vmem %s32_s19, 8192  ;;  %p3213_p1 = scmp.lt.s32.totalorder %s32_s19, %s32_s19 }
   0x6   :  { %p3209_p0 = scmp.ne.s32.totalorder %s32_s19, %s3208_s20  ;;  %p3214_p2 = scmp.lt.s32.totalorder %s3208_s20, %s3208_s20 }
   0x8   :  { %p3215_p3 = por %p3214_p2, %p3213_p1 }
   0xa   :  { %p3216_p4 = pnand %p3215_p3, %p3209_p0 }
   0xc   :  { %3219 = shalt.err (!%p3216_p4)
}
   0xd   :  { %s3309_s21 = smov 256   ;;  %s3310_s22 = smov 16  }
   0xe   :  { %37 = dma.hbm_to_vmem [thread:$0]  %s4392_s1, 8192, %s32_s19, [#allocation8], %s3309_s21, %s3309_s21, %s3310_s22  }
   0xf   :  { %s3311_s25 = smov [#allocation4]  }
  0x10   :  { %s19_s26 = sshll.u32 %s3311_s25, 4  ;;  %s20_s26 = int_to_ptr.vmem [resolvable:$true] %s19_s26 }
  0x11   :  { %s3228_s27 = scalar_lea.vmem %s20_s26, 2304  ;;  %p3233_p6 = scmp.lt.s32.totalorder %s20_s26, %s20_s26 }
  0x12   :  { %p3229_p5 = scmp.ne.s32.totalorder %s20_s26, %s3228_s27  ;;  %p3234_p7 = scmp.lt.s32.totalorder %s3228_s27, %s3228_s27 }
  0x14   :  { %p3235_p8 = por %p3234_p7, %p3233_p6 }
  0x16   :  { %p3236_p9 = pnand %p3235_p8, %p3229_p5 }
  0x18   :  { %3239 = shalt.err (!%p3236_p9)
}
  0x19   :  { %s3312_s28 = smov 128   ;;  %s3313_s29 = smov 8  }
  0x1a   :  { %25 = dma.hbm_to_vmem [thread:$0]  %s4391_s0, 2304, %s20_s26, [#allocation5], %s3312_s28, %s3312_s28, %s3313_s29  }
  0x1b   :  { %s3314_s7 = smov [#allocation9]   ;;  %s3315_s9 = smov [#allocation10]  }
  0x1c   :  { %s44_s8 = sshll.u32 %s3314_s7, 4  ;;  %s53_s1 = sshll.u32 %s3315_s9, 4  ;;  %s45_s8 = int_to_ptr.vmem [resolvable:$true] %s44_s8  ;;  %s54_s1 = int_to_ptr.vmem [resolvable:$true] %s53_s1 }
  0x1d   :  { %s3248_s10 = scalar_lea.vmem %s45_s8, 64  ;;  %p3253_p11 = scmp.lt.s32.totalorder %s45_s8, %s45_s8 }
  0x1e   :  { %p3249_p10 = scmp.ne.s32.totalorder %s45_s8, %s3248_s10  ;;  %p3254_p12 = scmp.lt.s32.totalorder %s3248_s10, %s3248_s10 }
  0x20   :  { %p3255_p13 = por %p3254_p12, %p3253_p11 }
  0x22   :  { %p3256_p0 = pnand %p3255_p13, %p3249_p10 }
  0x24   :  { %3259 = shalt.err (!%p3256_p0)
}
  0x25   :  { %47 = dma.hbm_to_vmem [thread:$0]  %s4393_s2, 64, %s45_s8, [#allocation8]  }
  0x26   :  { %s3268_s13 = scalar_lea.vmem %s54_s1, 8192  ;;  %p3273_p2 = scmp.lt.s32.totalorder %s54_s1, %s54_s1 }
  0x27   :  { %p3269_p1 = scmp.ne.s32.totalorder %s54_s1, %s3268_s13  ;;  %p3274_p3 = scmp.lt.s32.totalorder %s3268_s13, %s3268_s13 }
  0x29   :  { %p3275_p4 = por %p3274_p3, %p3273_p2 }
  0x2b   :  { %p3276_p5 = pnand %p3275_p4, %p3269_p1 }
  0x2d   :  { %3279 = shalt.err (!%p3276_p5)
}
  0x2e   :  { %59 = dma.hbm_to_vmem [thread:$0]  %s4394_s3, 8192, %s54_s1, [#allocation11], %s3312_s28, %s3312_s28, %s3313_s29  }
  0x2f   :  { %3300 = dma.done.wait [#allocation5], 2304  }
  0x30   :  { %3301 = vsyncadd [#allocation5], 4294964992 }
  0x31   :  { %3302 = dma.done.wait [#allocation8], 8256  }
  0x32   :  { %3303 = vsyncadd [#allocation8], 4294959040 }
  0x33   :  { %3304 = dma.done.wait [#allocation11], 8192  }
  0x34   :  { %3305 = vsyncadd [#allocation11], 4294959104  ;;  %v3362_v0 = vld [vmem:[#allocation4] sm:$0xff]  ;;  %v3364_v1 = vld [vmem:[#allocation4 + $0x10] sm:$0xff] }
  0x35   :  { %v3366_v2 = vld [vmem:[#allocation4 + $0x8] sm:$0xff]  ;;  %v96_v3 = vunpack.c.l.bf16 %v3362_v0  ;;  %v97_v4 = vunpack.c.h.bf16 %v3362_v0  ;;  %v100_v5 = vunpack.c.l.bf16 %v3364_v1  ;;  %v101_v6 = vunpack.c.h.bf16 %v3364_v1  ;;  %v3372_v7 = vld [vmem:[#allocation4 + $0x18] sm:$0xff]  ;;  %v3374_v8 = vld [vmem:[#allocation4 + $0x20] sm:$0xff] }
  0x36   :  { %v98_v9 = vunpack.c.l.bf16 %v3366_v2  ;;  %v99_v10 = vunpack.c.h.bf16 %v3366_v2  ;;  %v102_v11 = vunpack.c.l.bf16 %v3372_v7  ;;  %v103_v12 = vunpack.c.h.bf16 %v3372_v7  ;;  %v3380_v13 = vld [vmem:[#allocation4 + $0x28] sm:$0xff]  ;;  %v3402_v22 = vld [vmem:[#allocation4 + $0x30] sm:$0xff]  ;;  %v3404_v23 = vld [vmem:[#allocation4 + $0x38] sm:$0xff] }
  0x37   :  { %v132_v14 = vadd.f32 %v97_v4, %v96_v3  ;;  %v138_v15 = vadd.f32 %v101_v6, %v100_v5  ;;  %v104_v16 = vunpack.c.l.bf16 %v3374_v8  ;;  %v105_v17 = vunpack.c.h.bf16 %v3374_v8  ;;  %v3406_v24 = vld [vmem:[#allocation4 + $0x40] sm:$0xff]  ;;  %v3413_v27 = vld [vmem:[#allocation4 + $0x48] sm:$0xff]  ;;  %v3422_v32 = vld [vmem:[#allocation4 + $0x50] sm:$0xff] }
  0x38   :  { %v135_v18 = vadd.f32 %v99_v10, %v98_v9  ;;  %v141_v19 = vadd.f32 %v103_v12, %v102_v11  ;;  %v106_v20 = vunpack.c.l.bf16 %v3380_v13  ;;  %v107_v21 = vunpack.c.h.bf16 %v3380_v13  ;;  %v3426_v35 = vld [vmem:[#allocation4 + $0x58] sm:$0xff]  ;;  %v3438_v40 = vld [vmem:[#allocation4 + $0x60] sm:$0xff]  ;;  %v3445_v43 = vld [vmem:[#allocation4 + $0x68] sm:$0xff] }
  0x39   :  { %133 = vadd.xlane.f32.xlu0 %v132_v14  ;;  %139 = vadd.xlane.f32.xlu1 %v138_v15  ;;  %v144_v25 = vadd.f32 %v105_v17, %v104_v16  ;;  %v108_v26 = vunpack.c.l.bf16 %v3402_v22  ;;  %v109_v29 = vunpack.c.h.bf16 %v3402_v22  ;;  %v110_v30 = vunpack.c.l.bf16 %v3404_v23  ;;  %v3454_v48 = vld [vmem:[#allocation4 + $0x70] sm:$0xff]  ;;  %v3458_v51 = vld [vmem:[#allocation4 + $0x78] sm:$0xff]  ;;  %v3470_v56 = vld [vmem:[#allocation4 + $0x80] sm:$0xff] }
  0x3a   :  { %v147_v28 = vadd.f32 %v107_v21, %v106_v20  ;;  %v111_v31 = vunpack.c.h.bf16 %v3404_v23  ;;  %v112_v33 = vunpack.c.l.bf16 %v3406_v24  ;;  %v113_v34 = vunpack.c.h.bf16 %v3406_v24  ;;  %v3477_v59 = vld [vmem:[#allocation4 + $0x88] sm:$0xff] }
  0x3b   :  { %v150_v36 = vadd.f32 %v109_v29, %v108_v26  ;;  %v114_v38 = vunpack.c.l.bf16 %v3413_v27  ;;  %v115_v39 = vunpack.c.h.bf16 %v3413_v27  ;;  %v116_v42 = vunpack.c.l.bf16 %v3422_v32 }
  0x3c   :  { %v153_v37 = vadd.f32 %v111_v31, %v110_v30  ;;  %v156_v41 = vadd.f32 %v113_v34, %v112_v33  ;;  %v117_v45 = vunpack.c.h.bf16 %v3422_v32  ;;  %v118_v46 = vunpack.c.l.bf16 %v3426_v35 }
  0x3d   :  { %136 = vadd.xlane.f32.xlu0 %v135_v18  ;;  %142 = vadd.xlane.f32.xlu1 %v141_v19  ;;  %v159_v44 = vadd.f32 %v115_v39, %v114_v38  ;;  %v119_v47 = vunpack.c.h.bf16 %v3426_v35  ;;  %v120_v49 = vunpack.c.l.bf16 %v3438_v40  ;;  %v121_v50 = vunpack.c.h.bf16 %v3438_v40 }
  0x3e   :  { %v162_v52 = vadd.f32 %v117_v45, %v116_v42  ;;  %v122_v54 = vunpack.c.l.bf16 %v3445_v43  ;;  %v123_v55 = vunpack.c.h.bf16 %v3445_v43  ;;  %v124_v58 = vunpack.c.l.bf16 %v3454_v48 }
  0x3f   :  { %v165_v53 = vadd.f32 %v119_v47, %v118_v46  ;;  %v168_v57 = vadd.f32 %v121_v50, %v120_v49  ;;  %v125_v61 = vunpack.c.h.bf16 %v3454_v48  ;;  %v126_v62 = vunpack.c.l.bf16 %v3458_v51 }
  0x40   :  { %v171_v60 = vadd.f32 %v123_v55, %v122_v54  ;;  %v127_v63 = vunpack.c.h.bf16 %v3458_v51  ;;  %v4398_v14 = vunpack.c.l.bf16 %v3470_v56  ;;  %v4397_v15 = vunpack.c.h.bf16 %v3470_v56 }
  0x41   :  { %145 = vadd.xlane.f32.xlu0 %v144_v25  ;;  %148 = vadd.xlane.f32.xlu1 %v147_v28  ;;  %v174_v18 = vadd.f32 %v125_v61, %v124_v58  ;;  %v4400_v25 = vunpack.c.l.bf16 %v3477_v59  ;;  %v4399_v28 = vunpack.c.h.bf16 %v3477_v59 }
  0x42   :  { %v177_v19 = vadd.f32 %v127_v63, %v126_v62 }
  0x45   :  { %151 = vadd.xlane.f32.xlu0 %v150_v36  ;;  %154 = vadd.xlane.f32.xlu1 %v153_v37  ;;  %v180_v36 = vadd.f32 %v4397_v15, %v4398_v14  ;;  %v183_v37 = vadd.f32 %v4399_v28, %v4400_v25  ;;  %v2840_v15 = vld [vmem:[#allocation7 + $0xa4] ss:$16 sps:$4 sm:$0xff]   ;;  %v2842_v14 = vld [vmem:[#allocation7 + $0xac] ss:$16 sps:$4 sm:$0xff]  }
  0x46   :  { %v2846_v28 = vld [vmem:[#allocation7 + $0x84] ss:$16 sps:$4 sm:$0xff]   ;;  %v2848_v25 = vld [vmem:[#allocation7 + $0x8c] ss:$16 sps:$4 sm:$0xff]  }
  0x49   :  { %157 = vadd.xlane.f32.xlu0 %v156_v41  ;;  %160 = vadd.xlane.f32.xlu1 %v159_v44  ;;  %v2828_v41 = vld [vmem:[#allocation7 + $0xe4] ss:$16 sps:$4 sm:$0xff]   ;;  %v2830_v44 = vld [vmem:[#allocation7 + $0xec] ss:$16 sps:$4 sm:$0xff]  }
  0x4a   :  { %1097 = vmatprep.subr.bf16.mxu0 %v2828_v41  ;;  %1220 = vmatprep.subr.bf16.mxu1 %v2830_v44  ;;  %v2850_v41 = vld [vmem:[#allocation7 + $0x80] ss:$16 sps:$4 sm:$0xff]   ;;  %v2851_v44 = vld [vmem:[#allocation7 + $0x88] ss:$16 sps:$4 sm:$0xff]  }
  0x4d   :  { %163 = vadd.xlane.f32.xlu0 %v162_v52  ;;  %166 = vadd.xlane.f32.xlu1 %v165_v53  ;;  %v2832_v52 = vld [vmem:[#allocation7 + $0xe0] ss:$16 sps:$4 sm:$0xff]   ;;  %v2833_v53 = vld [vmem:[#allocation7 + $0xe8] ss:$16 sps:$4 sm:$0xff]  }
  0x4e   :  { %1098 = vmatpush1.bf16.msra.mxu0 %v2832_v52  ;;  %1221 = vmatpush1.bf16.msra.mxu1 %v2833_v53  ;;  %v2852_v52 = vld [vmem:[#allocation7 + $0x64] ss:$16 sps:$4 sm:$0xff]   ;;  %v2854_v53 = vld [vmem:[#allocation7 + $0x6c] ss:$16 sps:$4 sm:$0xff]  }
  0x51   :  { %169 = vadd.xlane.f32.xlu0 %v168_v57  ;;  %172 = vadd.xlane.f32.xlu1 %v171_v60  ;;  %v2834_v57 = vld [vmem:[#allocation7 + $0xc4] ss:$16 sps:$4 sm:$0xff]   ;;  %v2836_v60 = vld [vmem:[#allocation7 + $0xcc] ss:$16 sps:$4 sm:$0xff]  }
  0x52   :  { %1099 = vmatprep.subr.bf16.mxu0 %v2834_v57  ;;  %1222 = vmatprep.subr.bf16.mxu1 %v2836_v60  ;;  %v2856_v57 = vld [vmem:[#allocation7 + $0x60] ss:$16 sps:$4 sm:$0xff]   ;;  %v2857_v60 = vld [vmem:[#allocation7 + $0x68] ss:$16 sps:$4 sm:$0xff]  }
  0x55   :  { %175 = vadd.xlane.f32.xlu0 %v174_v18  ;;  %178 = vadd.xlane.f32.xlu1 %v177_v19  ;;  %v2838_v18 = vld [vmem:[#allocation7 + $0xc0] ss:$16 sps:$4 sm:$0xff]   ;;  %v2839_v19 = vld [vmem:[#allocation7 + $0xc8] ss:$16 sps:$4 sm:$0xff]  }
  0x56   :  { %1100 = vmatpush1.bf16.msra.mxu0 %v2838_v18  ;;  %1223 = vmatpush1.bf16.msra.mxu1 %v2839_v19  ;;  %v2858_v18 = vld [vmem:[#allocation7 + $0x44] ss:$16 sps:$4 sm:$0xff]   ;;  %v2860_v19 = vld [vmem:[#allocation7 + $0x4c] ss:$16 sps:$4 sm:$0xff]  }
  0x57   :  { %1101 = vmatprep.subr.bf16.mxu0 %v2840_v15  ;;  %1224 = vmatprep.subr.bf16.mxu1 %v2842_v14  ;;  %v2862_v14 = vld [vmem:[#allocation7 + $0x40] ss:$16 sps:$4 sm:$0xff]   ;;  %v2863_v15 = vld [vmem:[#allocation7 + $0x48] ss:$16 sps:$4 sm:$0xff]  }
  0x59   :  { %181 = vadd.xlane.f32.xlu0 %v180_v36  ;;  %184 = vadd.xlane.f32.xlu1 %v183_v37  ;;  %v2844_v36 = vld [vmem:[#allocation7 + $0xa0] ss:$16 sps:$4 sm:$0xff]   ;;  %v2845_v37 = vld [vmem:[#allocation7 + $0xa8] ss:$16 sps:$4 sm:$0xff]  }
  0x5a   :  { %1102 = vmatpush1.bf16.msra.mxu0 %v2844_v36  ;;  %1225 = vmatpush1.bf16.msra.mxu1 %v2845_v37  ;;  %v2864_v36 = vld [vmem:[#allocation7 + $0x24] ss:$16 sps:$4 sm:$0xff]   ;;  %v2866_v37 = vld [vmem:[#allocation7 + $0x2c] ss:$16 sps:$4 sm:$0xff]  }
  0x5b   :  { %1103 = vmatprep.subr.bf16.mxu0 %v2846_v28  ;;  %1226 = vmatprep.subr.bf16.mxu1 %v2848_v25  ;;  %v2868_v25 = vld [vmem:[#allocation7 + $0x20] ss:$16 sps:$4 sm:$0xff]   ;;  %v2869_v28 = vld [vmem:[#allocation7 + $0x28] ss:$16 sps:$4 sm:$0xff]  }
  0x5e   :  { %1104 = vmatpush1.bf16.msra.mxu0 %v2850_v41  ;;  %1227 = vmatpush1.bf16.msra.mxu1 %v2851_v44  ;;  %v2870_v41 = vld [vmem:[#allocation7 + $0x4] ss:$16 sps:$4 sm:$0xff]   ;;  %v2872_v44 = vld [vmem:[#allocation7 + $0xc] ss:$16 sps:$4 sm:$0xff]  }
  0x5f   :  { %1105 = vmatprep.subr.bf16.mxu0 %v2852_v52  ;;  %1228 = vmatprep.subr.bf16.mxu1 %v2854_v53  ;;  %v2874_v52 = vld [vmem:[#allocation7] ss:$16 sps:$4 sm:$0xff]   ;;  %v2875_v53 = vld [vmem:[#allocation7 + $0x8] ss:$16 sps:$4 sm:$0xff]  }
  0x62   :  { %1106 = vmatpush1.bf16.msra.mxu0 %v2856_v57  ;;  %1229 = vmatpush1.bf16.msra.mxu1 %v2857_v60  ;;  %v2876_v57 = vld [vmem:[#allocation7 + $0x1e4] ss:$16 sps:$4 sm:$0xff]   ;;  %v2878_v60 = vld [vmem:[#allocation7 + $0x1ec] ss:$16 sps:$4 sm:$0xff]  }
  0x63   :  { %1107 = vmatprep.subr.bf16.mxu0 %v2858_v18  ;;  %1230 = vmatprep.subr.bf16.mxu1 %v2860_v19  ;;  %v2880_v18 = vld [vmem:[#allocation7 + $0x1e0] ss:$16 sps:$4 sm:$0xff]   ;;  %v2881_v19 = vld [vmem:[#allocation7 + $0x1e8] ss:$16 sps:$4 sm:$0xff]  }
  0x66   :  { %1108 = vmatpush1.bf16.msra.mxu0 %v2862_v14  ;;  %1231 = vmatpush1.bf16.msra.mxu1 %v2863_v15  ;;  %v2882_v14 = vld [vmem:[#allocation7 + $0x1c4] ss:$16 sps:$4 sm:$0xff]   ;;  %v2884_v15 = vld [vmem:[#allocation7 + $0x1cc] ss:$16 sps:$4 sm:$0xff]  }
  0x67   :  { %1109 = vmatprep.subr.bf16.mxu0 %v2864_v36  ;;  %1232 = vmatprep.subr.bf16.mxu1 %v2866_v37 }
  0x6a   :  { %1110 = vmatpush1.bf16.msra.mxu0 %v2868_v25  ;;  %1233 = vmatpush1.bf16.msra.mxu1 %v2869_v28 }
  0x6b   :  { %1111 = vmatprep.subr.bf16.mxu0 %v2870_v41  ;;  %1234 = vmatprep.subr.bf16.mxu1 %v2872_v44 }
  0x6e   :  { %1112 = vmatpush1.bf16.msra.mxu0 %v2874_v52  ;;  %1235 = vmatpush1.bf16.msra.mxu1 %v2875_v53 }
  0x6f   :  { %1113 = vmatprep.subr.bf16.mxu0 %v2876_v57  ;;  %1236 = vmatprep.subr.bf16.mxu1 %v2878_v60 }
  0x72   :  { %1114 = vmatpush2.bf16.msra.mxu0 %v2880_v18  ;;  %1237 = vmatpush2.bf16.msra.mxu1 %v2881_v19 }
  0x73   :  { %1115 = vmatprep.subr.bf16.mxu0 %v2882_v14  ;;  %1238 = vmatprep.subr.bf16.mxu1 %v2884_v15 }
  0xc2   :  { %v134_v36 = vpop.xlane.xlu0 %133  ;;  %v140_v37 = vpop.xlane.xlu1 %139 }
  0xc3   :  { %v187_v25 = vmul.f32 0.00390625, %v134_v36  ;;  %v189_v28 = vmul.f32 0.00390625, %v140_v37 }
  0xc5   :  { %v3508_v41 = vsub.f32 %v96_v3, %v187_v25  ;;  %v3512_v44 = vsub.f32 %v97_v4, %v187_v25  ;;  %v3516_v52 = vsub.f32 %v100_v5, %v189_v28  ;;  %v3520_v53 = vsub.f32 %v101_v6, %v189_v28 }
  0xc6   :  { %v137_v57 = vpop.xlane.xlu0 %136  ;;  %v143_v60 = vpop.xlane.xlu1 %142 }
  0xc7   :  { %v188_v18 = vmul.f32 0.00390625, %v137_v57  ;;  %v190_v19 = vmul.f32 0.00390625, %v143_v60  ;;  %v241_v3 = vmul.f32 %v3508_v41, %v3508_v41  ;;  %v242_v0 = vmul.f32 %v3512_v44, %v3512_v44 }
  0xc8   :  { %v245_v4 = vmul.f32 %v3516_v52, %v3516_v52  ;;  %v246_v5 = vmul.f32 %v3520_v53, %v3520_v53 }
  0xc9   :  { %v3532_v1 = vsub.f32 %v98_v9, %v188_v18  ;;  %v3536_v6 = vsub.f32 %v99_v10, %v188_v18  ;;  %v3540_v14 = vsub.f32 %v102_v11, %v190_v19  ;;  %v3544_v15 = vsub.f32 %v103_v12, %v190_v19 }
  0xca   :  { %v146_v36 = vpop.xlane.xlu0 %145  ;;  %v277_v37 = vadd.f32 %v242_v0, %v241_v3  ;;  %v149_v25 = vpop.xlane.xlu1 %148  ;;  %v283_v10 = vadd.f32 %v246_v5, %v245_v4 }
  0xcb   :  { %v191_v28 = vmul.f32 0.00390625, %v146_v36  ;;  %v192_v57 = vmul.f32 0.00390625, %v149_v25  ;;  %v243_v9 = vmul.f32 %v3532_v1, %v3532_v1  ;;  %v244_v2 = vmul.f32 %v3536_v6, %v3536_v6 }
  0xcc   :  { %278 = vadd.xlane.f32.xlu0 %v277_v37  ;;  %v247_v11 = vmul.f32 %v3540_v14, %v3540_v14  ;;  %v248_v7 = vmul.f32 %v3544_v15, %v3544_v15 }
  0xcd   :  { %v3556_v12 = vsub.f32 %v104_v16, %v191_v28  ;;  %v3560_v60 = vsub.f32 %v105_v17, %v191_v28  ;;  %v3564_v18 = vsub.f32 %v106_v20, %v192_v57  ;;  %v3568_v19 = vsub.f32 %v107_v21, %v192_v57 }
  0xce   :  { %v152_v3 = vpop.xlane.xlu0 %151  ;;  %v280_v0 = vadd.f32 %v244_v2, %v243_v9  ;;  %v155_v4 = vpop.xlane.xlu1 %154  ;;  %v286_v17 = vadd.f32 %v248_v7, %v247_v11  ;;  %v2887_v7 = vld [vmem:[#allocation7 + $0x1c8] ss:$16 sps:$4 sm:$0xff]  }
  0xcf   :  { %v193_v5 = vmul.f32 0.00390625, %v152_v3  ;;  %v194_v36 = vmul.f32 0.00390625, %v155_v4  ;;  %v249_v16 = vmul.f32 %v3556_v12, %v3556_v12  ;;  %v250_v8 = vmul.f32 %v3560_v60, %v3560_v60  ;;  %1239 = vmatpush2.bf16.msra.mxu1 %v2887_v7  ;;  %v2896_v7 = vld [vmem:[#allocation7 + $0x18c] ss:$16 sps:$4 sm:$0xff]  }
  0xd0   :  { %284 = vadd.xlane.f32.xlu0 %v283_v10  ;;  %281 = vadd.xlane.f32.xlu1 %v280_v0  ;;  %v251_v20 = vmul.f32 %v3564_v18, %v3564_v18  ;;  %v252_v13 = vmul.f32 %v3568_v19, %v3568_v19 }
  0xd1   :  { %v3580_v21 = vsub.f32 %v108_v26, %v193_v5  ;;  %v3584_v37 = vsub.f32 %v109_v29, %v193_v5  ;;  %v3588_v25 = vsub.f32 %v110_v30, %v194_v36  ;;  %v3592_v28 = vsub.f32 %v111_v31, %v194_v36  ;;  %v2886_v31 = vld [vmem:[#allocation7 + $0x1c0] ss:$16 sps:$4 sm:$0xff]  }
  0xd2   :  { %v158_v57 = vpop.xlane.xlu0 %157  ;;  %v289_v9 = vadd.f32 %v250_v8, %v249_v16  ;;  %v161_v2 = vpop.xlane.xlu1 %160  ;;  %v292_v29 = vadd.f32 %v252_v13, %v251_v20  ;;  %1116 = vmatpush2.bf16.msra.mxu0 %v2886_v31  ;;  %v2888_v20 = vld [vmem:[#allocation7 + $0x1a4] ss:$16 sps:$4 sm:$0xff]  }
  0xd3   :  { %v195_v10 = vmul.f32 0.00390625, %v158_v57  ;;  %v196_v11 = vmul.f32 0.00390625, %v161_v2  ;;  %v253_v26 = vmul.f32 %v3580_v21, %v3580_v21  ;;  %v254_v22 = vmul.f32 %v3584_v37, %v3584_v37  ;;  %1117 = vmatprep.subr.bf16.mxu0 %v2888_v20  ;;  %v2894_v31 = vld [vmem:[#allocation7 + $0x184] ss:$16 sps:$4 sm:$0xff]  }
  0xd4   :  { %287 = vadd.xlane.f32.xlu1 %v286_v17  ;;  %290 = vadd.xlane.f32.xlu0 %v289_v9  ;;  %v255_v30 = vmul.f32 %v3588_v25, %v3588_v25  ;;  %v256_v23 = vmul.f32 %v3592_v28, %v3592_v28 }
  0xd5   :  { %v3604_v3 = vsub.f32 %v112_v33, %v195_v10  ;;  %v3608_v0 = vsub.f32 %v113_v34, %v195_v10  ;;  %v3612_v4 = vsub.f32 %v114_v38, %v196_v11  ;;  %v3616_v5 = vsub.f32 %v115_v39, %v196_v11  ;;  %v2890_v38 = vld [vmem:[#allocation7 + $0x1ac] ss:$16 sps:$4 sm:$0xff]   ;;  %v2892_v11 = vld [vmem:[#allocation7 + $0x1a0] ss:$16 sps:$4 sm:$0xff]  }
  0xd6   :  { %v164_v36 = vpop.xlane.xlu0 %163  ;;  %v295_v16 = vadd.f32 %v254_v22, %v253_v26  ;;  %v167_v8 = vpop.xlane.xlu1 %166  ;;  %v298_v27 = vadd.f32 %v256_v23, %v255_v30  ;;  %v2893_v26 = vld [vmem:[#allocation7 + $0x1a8] ss:$16 sps:$4 sm:$0xff]   ;;  %1240 = vmatprep.subr.bf16.mxu1 %v2890_v38  ;;  %1118 = vmatpush2.bf16.msra.mxu0 %v2892_v11 }
  0xd7   :  { %v197_v17 = vmul.f32 0.00390625, %v164_v36  ;;  %v198_v33 = vmul.f32 0.00390625, %v167_v8  ;;  %v257_v24 = vmul.f32 %v3604_v3, %v3604_v3  ;;  %v258_v34 = vmul.f32 %v3608_v0, %v3608_v0  ;;  %1241 = vmatpush2.bf16.msra.mxu1 %v2893_v26  ;;  %1119 = vmatprep.subr.bf16.mxu0 %v2894_v31 }
  0xd8   :  { %293 = vadd.xlane.f32.xlu1 %v292_v29  ;;  %296 = vadd.xlane.f32.xlu0 %v295_v16  ;;  %v259_v39 = vmul.f32 %v3612_v4, %v3612_v4  ;;  %v260_v13 = vmul.f32 %v3616_v5, %v3616_v5  ;;  %v4401_v31 = vunpack.c.l.bf16 %v3470_v56 }
  0xd9   :  { %v3628_v57 = vsub.f32 %v116_v42, %v197_v17  ;;  %v3632_v9 = vsub.f32 %v117_v45, %v197_v17  ;;  %v3636_v2 = vsub.f32 %v118_v46, %v198_v33  ;;  %v3640_v10 = vsub.f32 %v119_v47, %v198_v33  ;;  %v2898_v33 = vld [vmem:[#allocation7 + $0x180] ss:$16 sps:$4 sm:$0xff]   ;;  %1242 = vmatprep.subr.bf16.mxu1 %v2896_v7 }
  0xda   :  { %v170_v22 = vpop.xlane.xlu0 %169  ;;  %v301_v29 = vadd.f32 %v258_v34, %v257_v24  ;;  %v173_v30 = vpop.xlane.xlu1 %172  ;;  %v304_v35 = vadd.f32 %v260_v13, %v259_v39  ;;  %v2899_v24 = vld [vmem:[#allocation7 + $0x188] ss:$16 sps:$4 sm:$0xff]   ;;  %1120 = vmatpush2.bf16.msra.mxu0 %v2898_v33  ;;  %v2900_v39 = vld [vmem:[#allocation7 + $0x164] ss:$16 sps:$4 sm:$0xff]   ;;  %v2902_v13 = vld [vmem:[#allocation7 + $0x16c] ss:$16 sps:$4 sm:$0xff]   ;;  %v4402_v33 = vunpack.c.h.bf16 %v3470_v56 }
  0xdb   :  { %v199_v42 = vmul.f32 0.00390625, %v170_v22  ;;  %v200_v23 = vmul.f32 0.00390625, %v173_v30  ;;  %v261_v32 = vmul.f32 %v3628_v57, %v3628_v57  ;;  %v262_v45 = vmul.f32 %v3632_v9, %v3632_v9  ;;  %1243 = vmatpush2.bf16.msra.mxu1 %v2899_v24  ;;  %v2904_v30 = vld [vmem:[#allocation7 + $0x160] ss:$16 sps:$4 sm:$0xff]   ;;  %1121 = vmatprep.subr.bf16.mxu0 %v2900_v39  ;;  %v2912_v39 = vld [vmem:[#allocation7 + $0x124] ss:$16 sps:$4 sm:$0xff]  }
  0xdc   :  { %299 = vadd.xlane.f32.xlu1 %v298_v27  ;;  %302 = vadd.xlane.f32.xlu0 %v301_v29  ;;  %v263_v46 = vmul.f32 %v3636_v2, %v3636_v2  ;;  %v264_v47 = vmul.f32 %v3640_v10, %v3640_v10 }
  0xdd   :  { %v3652_v36 = vsub.f32 %v120_v49, %v199_v42  ;;  %v3656_v16 = vsub.f32 %v121_v50, %v199_v42  ;;  %v3660_v8 = vsub.f32 %v122_v54, %v200_v23  ;;  %v3664_v17 = vsub.f32 %v123_v55, %v200_v23  ;;  %v2905_v42 = vld [vmem:[#allocation7 + $0x168] ss:$16 sps:$4 sm:$0xff]   ;;  %1244 = vmatprep.subr.bf16.mxu1 %v2902_v13  ;;  %v2914_v13 = vld [vmem:[#allocation7 + $0x12c] ss:$16 sps:$4 sm:$0xff]  }
  0xde   :  { %v176_v34 = vpop.xlane.xlu0 %175  ;;  %v307_v20 = vadd.f32 %v262_v45, %v261_v32  ;;  %v179_v38 = vpop.xlane.xlu1 %178  ;;  %v310_v43 = vadd.f32 %v264_v47, %v263_v46  ;;  %1122 = vmatpush2.bf16.msra.mxu0 %v2904_v30  ;;  %v2906_v46 = vld [vmem:[#allocation7 + $0x144] ss:$16 sps:$4 sm:$0xff]   ;;  %v2908_v47 = vld [vmem:[#allocation7 + $0x14c] ss:$16 sps:$4 sm:$0xff]  }
  0xdf   :  { %v201_v49 = vmul.f32 0.00390625, %v176_v34  ;;  %v202_v27 = vmul.f32 0.00390625, %v179_v38  ;;  %v265_v40 = vmul.f32 %v3652_v36, %v3652_v36  ;;  %v266_v50 = vmul.f32 %v3656_v16, %v3656_v16  ;;  %1245 = vmatpush2.bf16.msra.mxu1 %v2905_v42  ;;  %1123 = vmatprep.subr.bf16.mxu0 %v2906_v46  ;;  %v2916_v42 = vld [vmem:[#allocation7 + $0x120] ss:$16 sps:$4 sm:$0xff]  }
  0xe0   :  { %305 = vadd.xlane.f32.xlu1 %v304_v35  ;;  %308 = vadd.xlane.f32.xlu0 %v307_v20  ;;  %v267_v54 = vmul.f32 %v3660_v8, %v3660_v8  ;;  %v268_v55 = vmul.f32 %v3664_v17, %v3664_v17  ;;  %v4403_v34 = vunpack.c.l.bf16 %v3477_v59  ;;  %v4404_v38 = vunpack.c.h.bf16 %v3477_v59 }
  0xe1   :  { %v3676_v11 = vsub.f32 %v124_v58, %v201_v49  ;;  %v3680_v26 = vsub.f32 %v125_v61, %v201_v49  ;;  %v3684_v22 = vsub.f32 %v126_v62, %v202_v27  ;;  %v3688_v29 = vsub.f32 %v127_v63, %v202_v27  ;;  %v2910_v27 = vld [vmem:[#allocation7 + $0x140] ss:$16 sps:$4 sm:$0xff]   ;;  %1246 = vmatprep.subr.bf16.mxu1 %v2908_v47 }
  0xe2   :  { %v182_v23 = vpop.xlane.xlu0 %181  ;;  %v313_v32 = vadd.f32 %v266_v50, %v265_v40  ;;  %v185_v45 = vpop.xlane.xlu1 %184  ;;  %v316_v51 = vadd.f32 %v268_v55, %v267_v54  ;;  %v2911_v40 = vld [vmem:[#allocation7 + $0x148] ss:$16 sps:$4 sm:$0xff]   ;;  %1124 = vmatpush2.bf16.msra.mxu0 %v2910_v27 }
  0xe3   :  { %v203_v58 = vmul.f32 0.00390625, %v182_v23  ;;  %v204_v35 = vmul.f32 0.00390625, %v185_v45  ;;  %v269_v48 = vmul.f32 %v3676_v11, %v3676_v11  ;;  %v270_v61 = vmul.f32 %v3680_v26, %v3680_v26  ;;  %1247 = vmatpush2.bf16.msra.mxu1 %v2911_v40  ;;  %v2917_v23 = vld [vmem:[#allocation7 + $0x128] ss:$16 sps:$4 sm:$0xff]   ;;  %1125 = vmatprep.subr.bf16.mxu0 %v2912_v39  ;;  %v2918_v45 = vld [vmem:[#allocation7 + $0x104] ss:$16 sps:$4 sm:$0xff]  }
  0xe4   :  { %311 = vadd.xlane.f32.xlu1 %v310_v43  ;;  %314 = vadd.xlane.f32.xlu0 %v313_v32  ;;  %v271_v62 = vmul.f32 %v3684_v22, %v3684_v22  ;;  %v272_v63 = vmul.f32 %v3688_v29, %v3688_v29 }
  0xe5   :  { %v3700_v7 = vsub.f32 %v4401_v31, %v203_v58  ;;  %v3704_v24 = vsub.f32 %v4402_v33, %v203_v58  ;;  %v3708_v20 = vsub.f32 %v4403_v34, %v204_v35  ;;  %v3712_v49 = vsub.f32 %v4404_v38, %v204_v35  ;;  %1248 = vmatprep.subr.bf16.mxu1 %v2914_v13  ;;  %v2920_v58 = vld [vmem:[#allocation7 + $0x10c] ss:$16 sps:$4 sm:$0xff]   ;;  %v2922_v35 = vld [vmem:[#allocation7 + $0x100] ss:$16 sps:$4 sm:$0xff]  }
  0xe6   :  { %v319_v50 = vadd.f32 %v270_v61, %v269_v48  ;;  %v322_v54 = vadd.f32 %v272_v63, %v271_v62  ;;  %1126 = vmatpush2.bf16.msra.mxu0 %v2916_v42  ;;  %v2923_v48 = vld [vmem:[#allocation7 + $0x108] ss:$16 sps:$4 sm:$0xff]  }
  0xe7   :  { %v273_v43 = vmul.f32 %v3700_v7, %v3700_v7  ;;  %v274_v56 = vmul.f32 %v3704_v24, %v3704_v24  ;;  %v275_v59 = vmul.f32 %v3708_v20, %v3708_v20  ;;  %v276_v55 = vmul.f32 %v3712_v49, %v3712_v49  ;;  %1249 = vmatpush2.bf16.msra.mxu1 %v2917_v23  ;;  %v2926_v61 = vld [vmem:[#allocation10 + $0x74] ss:$8 sps:$4 sm:$0xff]  }
  0xe8   :  { %317 = vadd.xlane.f32.xlu1 %v316_v51  ;;  %320 = vadd.xlane.f32.xlu0 %v319_v50  ;;  %v2929_v51 = vld [vmem:[#allocation10 + $0x174] ss:$8 sps:$4 sm:$0xff]  }
  0xe9   :  { %v325_v30 = vadd.f32 %v274_v56, %v273_v43  ;;  %v328_v32 = vadd.f32 %v276_v55, %v275_v59  ;;  %1127 = vmatprep.subr.bf16.mxu0 %v2918_v45  ;;  %1250 = vmatprep.subr.bf16.mxu1 %v2920_v58 }
  0xea   :  { %1128 = vmatpush2.bf16.msra.mxu0 %v2922_v35 }
  0xeb   :  { %1251 = vmatpush2.bf16.msra.mxu1 %v2923_v48  ;;  %2159 = vmatprep.subr.bf16.mxu0 %v2926_v61 }
  0xec   :  { %323 = vadd.xlane.f32.xlu1 %v322_v54  ;;  %326 = vadd.xlane.f32.xlu0 %v325_v30 }
  0xed   :  { %2282 = vmatprep.subr.bf16.mxu1 %v2929_v51 }
  0xf0   :  { %329 = vadd.xlane.f32.xlu1 %v328_v32 }
 0x155   :  { %v279_v62 = vpop.xlane.xlu0 %278 }
 0x156   :  { %v331_v63 = vmul.f32 0.00390625, %v279_v62 }
 0x158   :  { %v349_v46 = vadd.f32 1e-05, %v331_v63 }
 0x159   :  { %v282_v47 = vpop.xlane.xlu1 %281  ;;  %v285_v31 = vpop.xlane.xlu0 %284 }
 0x15a   :  { %v332_v33 = vmul.f32 0.00390625, %v282_v47  ;;  %v333_v34 = vmul.f32 0.00390625, %v285_v31  ;;  %3020 = vrsqrt.f32 %v349_v46 }
 0x15c   :  { %v350_v38 = vadd.f32 1e-05, %v332_v33  ;;  %v351_v27 = vadd.f32 1e-05, %v333_v34 }
 0x15d   :  { %v288_v40 = vpop.xlane.xlu1 %287  ;;  %v291_v50 = vpop.xlane.xlu0 %290 }
 0x15e   :  { %3022 = vrsqrt.f32 %v350_v38  ;;  %v334_v43 = vmul.f32 0.00390625, %v288_v40  ;;  %v335_v56 = vmul.f32 0.00390625, %v291_v50  ;;  %v2927_v40 = vld [vmem:[#allocation10 + $0x170] ss:$8 sps:$4 sm:$0xff]  }
 0x15f   :  { %3024 = vrsqrt.f32 %v351_v27  ;;  %v2924_v27 = vld [vmem:[#allocation10 + $0x70] ss:$8 sps:$4 sm:$0xff]  }
 0x160   :  { %v352_v54 = vadd.f32 1e-05, %v334_v43  ;;  %v353_v59 = vadd.f32 1e-05, %v335_v56  ;;  %v2932_v56 = vld [vmem:[#allocation10 + $0x64] ss:$8 sps:$4 sm:$0xff]  }
 0x161   :  { %v294_v55 = vpop.xlane.xlu1 %293  ;;  %v297_v13 = vpop.xlane.xlu0 %296 }
 0x162   :  { %3026 = vrsqrt.f32 %v352_v54  ;;  %v336_v39 = vmul.f32 0.00390625, %v294_v55  ;;  %v337_v23 = vmul.f32 0.00390625, %v297_v13  ;;  %v2935_v54 = vld [vmem:[#allocation10 + $0x164] ss:$8 sps:$4 sm:$0xff]   ;;  %v2930_v13 = vld [vmem:[#allocation10 + $0x60] ss:$8 sps:$4 sm:$0xff]  }
 0x163   :  { %3028 = vrsqrt.f32 %v353_v59 }
 0x164   :  { %v354_v30 = vadd.f32 1e-05, %v336_v39  ;;  %v355_v48 = vadd.f32 1e-05, %v337_v23 }
 0x165   :  { %v300_v42 = vpop.xlane.xlu1 %299  ;;  %v303_v51 = vpop.xlane.xlu0 %302 }
 0x166   :  { %3030 = vrsqrt.f32 %v354_v30  ;;  %v338_v32 = vmul.f32 0.00390625, %v300_v42  ;;  %v339_v34 = vmul.f32 0.00390625, %v303_v51  ;;  %v2933_v30 = vld [vmem:[#allocation10 + $0x160] ss:$8 sps:$4 sm:$0xff]  }
 0x167   :  { %v3021_v45 = vpop.eup %3020 }
 0x168   :  { %v356_v58 = vadd.f32 1e-05, %v338_v32  ;;  %v386_v62 = vmul.f32 %v3021_v45, %v3512_v44  ;;  %v385_v33 = vmul.f32 %v3021_v45, %v3508_v41  ;;  %v357_v55 = vadd.f32 1e-05, %v339_v34  ;;  %v2938_v45 = vld [vmem:[#allocation10 + $0x54] ss:$8 sps:$4 sm:$0xff]  }
 0x169   :  { %v306_v35 = vpop.xlane.xlu1 %305  ;;  %v309_v23 = vpop.xlane.xlu0 %308 }
 0x16a   :  { %3032 = vrsqrt.f32 %v356_v58  ;;  %v340_v63 = vmul.f32 0.00390625, %v306_v35 }
 0x16b   :  { %v3023_v61 = vpop.eup %3022  ;;  %3034 = vrsqrt.f32 %v355_v48  ;;  %v341_v48 = vmul.f32 0.00390625, %v309_v23 }
 0x16c   :  { %v388_v46 = vmul.f32 %v3023_v61, %v3536_v6  ;;  %v387_v47 = vmul.f32 %v3023_v61, %v3532_v1  ;;  %v3025_v31 = vpop.eup %3024  ;;  %v358_v59 = vadd.f32 1e-05, %v340_v63 }
 0x16d   :  { %v390_v44 = vmul.f32 %v3025_v31, %v3520_v53  ;;  %v312_v1 = vpop.xlane.xlu1 %311  ;;  %v2941_v53 = vld [vmem:[#allocation10 + $0x154] ss:$8 sps:$4 sm:$0xff]   ;;  %v389_v35 = vmul.f32 %v3025_v31, %v3516_v52  ;;  %v359_v52 = vadd.f32 1e-05, %v341_v48 }
 0x16e   :  { %v2802_v38 = vpack.c.bf16 %v388_v46, %v386_v62  ;;  %v2801_v43 = vpack.c.bf16 %v387_v47, %v385_v33  ;;  %3036 = vrsqrt.f32 %v358_v59  ;;  %v2939_v62 = vld [vmem:[#allocation10 + $0x150] ss:$8 sps:$4 sm:$0xff]   ;;  %v2944_v47 = vld [vmem:[#allocation10 + $0x44] ss:$8 sps:$4 sm:$0xff]   ;;  %v2965_v48 = vld [vmem:[#allocation10 + $0x114] ss:$8 sps:$4 sm:$0xff]  }
 0x16f   :  { %v3027_v50 = vpop.eup %3026  ;;  %3038 = vrsqrt.f32 %v357_v55  ;;  %v2947_v33 = vld [vmem:[#allocation10 + $0x144] ss:$8 sps:$4 sm:$0xff]   ;;  %v2951_v55 = vld [vmem:[#allocation10 + $0x130] ss:$8 sps:$4 sm:$0xff]  }
 0x170   :  { %1129 = vmatprep.mubr.bf16.mxu0 %v2802_v38  ;;  %1252 = vmatprep.mubr.bf16.mxu1 %v2802_v38  ;;  %v392_v6 = vmul.f32 %v3027_v50, %v3544_v15  ;;  %v3029_v41 = vpop.eup %3028  ;;  %v391_v32 = vmul.f32 %v3027_v50, %v3540_v14  ;;  %v342_v15 = vmul.f32 0.00390625, %v312_v1  ;;  %v2936_v14 = vld [vmem:[#allocation10 + $0x50] ss:$8 sps:$4 sm:$0xff]  }
 0x171   :  { %1130 = vmatmul.mubr.bf16.vlgmr.msra.gmra.mxu0 %v2801_v43  ;;  %1253 = vmatmul.mubr.bf16.vlgmr.msra.gmra.mxu1 %v2801_v43  ;;  %v394_v61 = vmul.f32 %v3029_v41, %v3560_v60  ;;  %v318_v38 = vpop.xlane.xlu1 %317  ;;  %v315_v60 = vpop.xlane.xlu0 %314  ;;  %v393_v59 = vmul.f32 %v3029_v41, %v3556_v12 }
 0x172   :  { %v2804_v39 = vpack.c.bf16 %v392_v6, %v390_v44  ;;  %2160 = vmatpush1.bf16.msra.mxu0 %v2924_v27  ;;  %2283 = vmatpush1.bf16.msra.mxu1 %v2927_v40  ;;  %v2803_v51 = vpack.c.bf16 %v391_v32, %v389_v35  ;;  %v360_v63 = vadd.f32 1e-05, %v342_v15  ;;  %v2942_v27 = vld [vmem:[#allocation10 + $0x40] ss:$8 sps:$4 sm:$0xff]   ;;  %v344_v50 = vmul.f32 0.00390625, %v318_v38 }
 0x173   :  { %v3031_v42 = vpop.eup %3030  ;;  %2161 = vmatprep.subr.bf16.mxu0 %v2932_v56  ;;  %2284 = vmatprep.subr.bf16.mxu1 %v2935_v54  ;;  %v2945_v40 = vld [vmem:[#allocation10 + $0x140] ss:$8 sps:$4 sm:$0xff]   ;;  %v2950_v56 = vld [vmem:[#allocation10 + $0x34] ss:$8 sps:$4 sm:$0xff]   ;;  %v343_v44 = vmul.f32 0.00390625, %v315_v60 }
 0x174   :  { %1139 = vmatprep.mubr.bf16.mxu0 %v2804_v39  ;;  %1262 = vmatprep.mubr.bf16.mxu1 %v2804_v39  ;;  %v396_v58 = vmul.f32 %v3031_v42, %v3568_v19  ;;  %v395_v31 = vmul.f32 %v3031_v42, %v3564_v18  ;;  %3040 = vrsqrt.f32 %v360_v63  ;;  %v2953_v54 = vld [vmem:[#allocation10 + $0x134] ss:$8 sps:$4 sm:$0xff]   ;;  %v2948_v18 = vld [vmem:[#allocation10 + $0x30] ss:$8 sps:$4 sm:$0xff]   ;;  %v362_v39 = vadd.f32 1e-05, %v344_v50 }
 0x175   :  { %3042 = vrsqrt.f32 %v359_v52  ;;  %v324_v23 = vpop.xlane.xlu1 %323  ;;  %v361_v12 = vadd.f32 1e-05, %v343_v44  ;;  %v2962_v35 = vld [vmem:[#allocation10 + $0x14] ss:$8 sps:$4 sm:$0xff]   ;;  %v2963_v63 = vld [vmem:[#allocation10 + $0x110] ss:$8 sps:$4 sm:$0xff]  }
 0x176   :  { %2162 = vmatpush1.bf16.msra.mxu0 %v2930_v13  ;;  %2285 = vmatpush1.bf16.msra.mxu1 %v2933_v30  ;;  %v2806_v46 = vpack.c.bf16 %v396_v58, %v394_v61  ;;  %v2805_v1 = vpack.c.bf16 %v395_v31, %v393_v59  ;;  %v2959_v30 = vld [vmem:[#allocation10 + $0x124] ss:$8 sps:$4 sm:$0xff]   ;;  %3044 = vrsqrt.f32 %v362_v39  ;;  %v346_v15 = vmul.f32 0.00390625, %v324_v23  ;;  %v2966_v60 = vld [vmem:[#allocation10] ss:$8 sps:$4 sm:$0xff]  }
 0x177   :  { %2163 = vmatprep.subr.bf16.mxu0 %v2938_v45  ;;  %2286 = vmatprep.subr.bf16.mxu1 %v2941_v53  ;;  %v3033_v34 = vpop.eup %3032  ;;  %v2954_v45 = vld [vmem:[#allocation10 + $0x20] ss:$8 sps:$4 sm:$0xff]   ;;  %3046 = vrsqrt.f32 %v361_v12  ;;  %v2974_v50 = vld [vmem:[#allocation10 + $0xf4] ss:$8 sps:$4 sm:$0xff]  }
 0x178   :  { %v3035_v19 = vpop.eup %3034  ;;  %v400_v43 = vmul.f32 %v3033_v34, %v3592_v28  ;;  %v2956_v28 = vld [vmem:[#allocation10 + $0x24] ss:$8 sps:$4 sm:$0xff]   ;;  %v399_v32 = vmul.f32 %v3033_v34, %v3588_v25  ;;  %v2957_v53 = vld [vmem:[#allocation10 + $0x120] ss:$8 sps:$4 sm:$0xff]   ;;  %v2960_v25 = vld [vmem:[#allocation10 + $0x10] ss:$8 sps:$4 sm:$0xff]  }
 0x179   :  { %1140 = vmatmul.mubr.bf16.gmra.mxu0 %v2803_v51  ;;  %1263 = vmatmul.mubr.bf16.gmra.mxu1 %v2803_v51  ;;  %v398_v6 = vmul.f32 %v3035_v19, %v3584_v37  ;;  %v321_v37 = vpop.xlane.xlu0 %320  ;;  %v397_v61 = vmul.f32 %v3035_v19, %v3580_v21  ;;  %v330_v38 = vpop.xlane.xlu1 %329  ;;  %v2969_v31 = vld [vmem:[#allocation10 + $0x100] ss:$8 sps:$4 sm:$0xff]  }
 0x17a   :  { %1149 = vmatprep.mubr.bf16.mxu0 %v2806_v46  ;;  %1272 = vmatprep.mubr.bf16.mxu1 %v2806_v46  ;;  %v345_v51 = vmul.f32 0.00390625, %v321_v37  ;;  %v364_v46 = vadd.f32 1e-05, %v346_v15 }
 0x17b   :  { %2164 = vmatpush1.bf16.msra.mxu0 %v2936_v14  ;;  %2287 = vmatpush1.bf16.msra.mxu1 %v2939_v62  ;;  %v2808_v13 = vpack.c.bf16 %v400_v43, %v398_v6  ;;  %v3037_v42 = vpop.eup %3036  ;;  %v2807_v62 = vpack.c.bf16 %v399_v32, %v397_v61  ;;  %v2977_v43 = vld [vmem:[#allocation10 + $0x1f4] ss:$8 sps:$4 sm:$0xff]   ;;  %v2975_v6 = vld [vmem:[#allocation10 + $0x1f0] ss:$8 sps:$4 sm:$0xff]   ;;  %v2983_v61 = vld [vmem:[#allocation10 + $0x1e4] ss:$8 sps:$4 sm:$0xff]  }
 0x17c   :  { %2165 = vmatprep.subr.bf16.mxu0 %v2944_v47  ;;  %2288 = vmatprep.subr.bf16.mxu1 %v2947_v33  ;;  %v3039_v41 = vpop.eup %3038  ;;  %v404_v58 = vmul.f32 %v3037_v42, %v3616_v5  ;;  %v2968_v5 = vld [vmem:[#allocation10 + $0x4] ss:$8 sps:$4 sm:$0xff]   ;;  %v363_v21 = vadd.f32 1e-05, %v345_v51  ;;  %v403_v19 = vmul.f32 %v3037_v42, %v3612_v4  ;;  %3048 = vrsqrt.f32 %v364_v46  ;;  %v2972_v4 = vld [vmem:[#allocation10 + $0xf0] ss:$8 sps:$4 sm:$0xff]  }
 0x17d   :  { %v402_v14 = vmul.f32 %v3039_v41, %v3608_v0  ;;  %v2971_v33 = vld [vmem:[#allocation10 + $0x104] ss:$8 sps:$4 sm:$0xff]   ;;  %v327_v0 = vpop.xlane.xlu0 %326  ;;  %v2981_v51 = vld [vmem:[#allocation10 + $0x1e0] ss:$8 sps:$4 sm:$0xff]   ;;  %v2998_v46 = vld [vmem:[#allocation10 + $0xb4] ss:$8 sps:$4 sm:$0xff]  }
 0x17e   :  { %3050 = vrsqrt.f32 %v363_v21  ;;  %v3002_v21 = vld [vmem:[#allocation10 + $0xa0] ss:$8 sps:$4 sm:$0xff]  }
 0x17f   :  { %2166 = vmatpush1.bf16.msra.mxu0 %v2942_v27  ;;  %2289 = vmatpush1.bf16.msra.mxu1 %v2945_v40  ;;  %v2810_v47 = vpack.c.bf16 %v404_v58, %v402_v14  ;;  %v348_v27 = vmul.f32 0.00390625, %v330_v38  ;;  %v2984_v14 = vld [vmem:[#allocation10 + $0xd0] ss:$8 sps:$4 sm:$0xff]   ;;  %v3007_v38 = vld [vmem:[#allocation10 + $0x1a4] ss:$8 sps:$4 sm:$0xff]  }
 0x180   :  { %2167 = vmatprep.subr.bf16.mxu0 %v2950_v56  ;;  %2290 = vmatprep.subr.bf16.mxu1 %v2953_v54  ;;  %v401_v56 = vmul.f32 %v3039_v41, %v3604_v3  ;;  %v347_v54 = vmul.f32 0.00390625, %v327_v0  ;;  %v3010_v0 = vld [vmem:[#allocation10 + $0x94] ss:$8 sps:$4 sm:$0xff]  }
 0x181   :  { %1150 = vmatmul.mubr.bf16.gmra.mxu0 %v2805_v1  ;;  %1273 = vmatmul.mubr.bf16.gmra.mxu1 %v2805_v1  ;;  %v3041_v34 = vpop.eup %3040  ;;  %v366_v1 = vadd.f32 1e-05, %v348_v27  ;;  %v3016_v27 = vld [vmem:[#allocation10 + $0x84] ss:$8 sps:$4 sm:$0xff]  }
 0x182   :  { %1159 = vmatprep.mubr.bf16.mxu0 %v2808_v13  ;;  %1282 = vmatprep.mubr.bf16.mxu1 %v2808_v13  ;;  %v3043_v52 = vpop.eup %3042  ;;  %v408_v40 = vmul.f32 %v3041_v34, %v3640_v10  ;;  %v2809_v44 = vpack.c.bf16 %v403_v19, %v401_v56  ;;  %v407_v39 = vmul.f32 %v3041_v34, %v3636_v2  ;;  %v3004_v34 = vld [vmem:[#allocation10 + $0xa4] ss:$8 sps:$4 sm:$0xff]   ;;  %v3013_v19 = vld [vmem:[#allocation10 + $0x194] ss:$8 sps:$4 sm:$0xff]   ;;  %v667_v56 = vlaneseq }
 0x183   :  { %2168 = vmatpush1.bf16.msra.mxu0 %v2948_v18  ;;  %2291 = vmatpush1.bf16.msra.mxu1 %v2951_v55  ;;  %v406_v59 = vmul.f32 %v3043_v52, %v3632_v9  ;;  %v3045_v10 = vpop.eup %3044  ;;  %v365_v55 = vadd.f32 1e-05, %v347_v54  ;;  %3052 = vrsqrt.f32 %v366_v1  ;;  %v405_v13 = vmul.f32 %v3043_v52, %v3628_v57  ;;  %v3005_v52 = vld [vmem:[#allocation10 + $0x1a0] ss:$8 sps:$4 sm:$0xff]  }
 0x184   :  { %2169 = vmatprep.subr.bf16.mxu0 %v2956_v28  ;;  %2292 = vmatprep.subr.bf16.mxu1 %v2959_v30  ;;  %v3047_v3 = vpop.eup %3046  ;;  %v412_v9 = vmul.f32 %v3045_v10, %v3664_v17  ;;  %v411_v2 = vmul.f32 %v3045_v10, %v3660_v8  ;;  %v3758_v54 = vshrl.u32 %v667_v56, 7 }
 0x185   :  { %v2812_v18 = vpack.c.bf16 %v408_v40, %v406_v59  ;;  %3054 = vrsqrt.f32 %v365_v55  ;;  %v410_v28 = vmul.f32 %v3047_v3, %v3656_v16  ;;  %v2811_v30 = vpack.c.bf16 %v407_v39, %v405_v13  ;;  %v3019_v40 = vld [vmem:[#allocation10 + $0x184] ss:$8 sps:$4 sm:$0xff]  }
 0x186   :  { %v409_v37 = vmul.f32 %v3047_v3, %v3652_v36  ;;  %v669_v59 = vsub.s32 0, %v3758_v54  ;;  %v681_v1 = vsub.s32 3, %v3758_v54 }
 0x187   :  { %2170 = vmatpush1.bf16.msra.mxu0 %v2954_v45  ;;  %2293 = vmatpush1.bf16.msra.mxu1 %v2957_v53  ;;  %v2814_v42 = vpack.c.bf16 %v412_v9, %v410_v28 }
 0x188   :  { %2171 = vmatprep.subr.bf16.mxu0 %v2962_v35  ;;  %2294 = vmatprep.subr.bf16.mxu1 %v2965_v48  ;;  %v2813_v57 = vpack.c.bf16 %v411_v2, %v409_v37 }
 0x189   :  { %1160 = vmatmul.mubr.bf16.gmra.mxu0 %v2807_v62  ;;  %1283 = vmatmul.mubr.bf16.gmra.mxu1 %v2807_v62  ;;  %v3049_v23 = vpop.eup %3048  ;;  %v2987_v62 = vld [vmem:[#allocation10 + $0x1d0] ss:$8 sps:$4 sm:$0xff]  }
 0x18a   :  { %1169 = vmatprep.mubr.bf16.mxu0 %v2810_v47  ;;  %1292 = vmatprep.mubr.bf16.mxu1 %v2810_v47  ;;  %v416_v41 = vmul.f32 %v3049_v23, %v3688_v29  ;;  %v415_v53 = vmul.f32 %v3049_v23, %v3684_v22  ;;  %v2980_v22 = vld [vmem:[#allocation10 + $0xe4] ss:$8 sps:$4 sm:$0xff]   ;;  %v3001_v47 = vld [vmem:[#allocation10 + $0x1b4] ss:$8 sps:$4 sm:$0xff]  }
 0x18b   :  { %2172 = vmatpush1.bf16.msra.mxu0 %v2960_v25  ;;  %2295 = vmatpush1.bf16.msra.mxu1 %v2963_v63  ;;  %v3051_v12 = vpop.eup %3050  ;;  %v2990_v25 = vld [vmem:[#allocation10 + $0xc0] ss:$8 sps:$4 sm:$0xff]  }
 0x18c   :  { %2173 = vmatprep.subr.bf16.mxu0 %v2968_v5  ;;  %2296 = vmatprep.subr.bf16.mxu1 %v2971_v33  ;;  %v414_v17 = vmul.f32 %v3051_v12, %v3680_v26  ;;  %v413_v8 = vmul.f32 %v3051_v12, %v3676_v11  ;;  %v2986_v11 = vld [vmem:[#allocation10 + $0xd4] ss:$8 sps:$4 sm:$0xff]   ;;  %v2993_v63 = vld [vmem:[#allocation10 + $0x1c0] ss:$8 sps:$4 sm:$0xff]   ;;  %v2996_v5 = vld [vmem:[#allocation10 + $0xb0] ss:$8 sps:$4 sm:$0xff]  }
 0x18d   :  { %v2999_v33 = vld [vmem:[#allocation10 + $0x1b0] ss:$8 sps:$4 sm:$0xff]  }
 0x18e   :  { %v2816_v32 = vpack.c.bf16 %v416_v41, %v414_v17  ;;  %v2815_v58 = vpack.c.bf16 %v415_v53, %v413_v8 }
 0x18f   :  { %2174 = vmatpush1.bf16.msra.mxu0 %v2966_v60  ;;  %2297 = vmatpush1.bf16.msra.mxu1 %v2969_v31  ;;  %v3008_v60 = vld [vmem:[#allocation10 + $0x90] ss:$8 sps:$4 sm:$0xff]  }
 0x190   :  { %2175 = vmatprep.subr.bf16.mxu0 %v2974_v50  ;;  %2298 = vmatprep.subr.bf16.mxu1 %v2977_v43  ;;  %v3053_v45 = vpop.eup %3052  ;;  %v3011_v31 = vld [vmem:[#allocation10 + $0x190] ss:$8 sps:$4 sm:$0xff]   ;;  %v3014_v50 = vld [vmem:[#allocation10 + $0x80] ss:$8 sps:$4 sm:$0xff]  }
 0x191   :  { %1170 = vmatmul.mubr.bf16.gmra.mxu0 %v2809_v44  ;;  %1293 = vmatmul.mubr.bf16.gmra.mxu1 %v2809_v44  ;;  %v420_v15 = vmul.f32 %v3053_v45, %v3712_v49  ;;  %v419_v26 = vmul.f32 %v3053_v45, %v3708_v20  ;;  %v2978_v49 = vld [vmem:[#allocation10 + $0xe0] ss:$8 sps:$4 sm:$0xff]   ;;  %v2995_v20 = vld [vmem:[#allocation10 + $0x1c4] ss:$8 sps:$4 sm:$0xff]   ;;  %v665_v44 = vld [vmem:[#allocation9] sm:$0xf] }
 0x192   :  { %1179 = vmatprep.mubr.bf16.mxu0 %v2812_v18  ;;  %1302 = vmatprep.mubr.bf16.mxu1 %v2812_v18  ;;  %v3055_v16 = vpop.eup %3054  ;;  %v3017_v43 = vld [vmem:[#allocation10 + $0x180] ss:$8 sps:$4 sm:$0xff]   ;;  %v3766_v18 = vrot.slane %v665_v44, %v669_v59  ;;  %v3774_v13 = vrot.slane %v665_v44, %v681_v1 }
 0x193   :  { %2176 = vmatpush2.bf16.msra.mxu0 %v2972_v4  ;;  %2299 = vmatpush2.bf16.msra.mxu1 %v2975_v6  ;;  %v418_v29 = vmul.f32 %v3055_v16, %v3704_v24  ;;  %v417_v35 = vmul.f32 %v3055_v16, %v3700_v7  ;;  %v2989_v24 = vld [vmem:[#allocation10 + $0x1d4] ss:$8 sps:$4 sm:$0xff]   ;;  %v2992_v7 = vld [vmem:[#allocation10 + $0xc4] ss:$8 sps:$4 sm:$0xff]   ;;  %v677_v4 = vsub.s32 2, %v3758_v54  ;;  %v673_v6 = vsub.s32 1, %v3758_v54 }
 0x194   :  { %2177 = vmatprep.subr.bf16.mxu0 %v2980_v22  ;;  %2300 = vmatprep.subr.bf16.mxu1 %v2983_v61 }
 0x195   :  { %v2818_v36 = vpack.c.bf16 %v420_v15, %v418_v29  ;;  %v2817_v48 = vpack.c.bf16 %v419_v26, %v417_v35  ;;  %v3768_v55 = vrot.slane %v665_v44, %v677_v4  ;;  %v3772_v39 = vrot.slane %v665_v44, %v673_v6 }
 0x197   :  { %2178 = vmatpush2.bf16.msra.mxu0 %v2978_v49  ;;  %2301 = vmatpush2.bf16.msra.mxu1 %v2981_v51 }
 0x198   :  { %2179 = vmatprep.subr.bf16.mxu0 %v2986_v11  ;;  %2302 = vmatprep.subr.bf16.mxu1 %v2989_v24 }
 0x199   :  { %1180 = vmatmul.mubr.bf16.gmra.mxu0 %v2811_v30  ;;  %1303 = vmatmul.mubr.bf16.gmra.mxu1 %v2811_v30 }
 0x19a   :  { %1189 = vmatprep.mubr.bf16.mxu0 %v2814_v42  ;;  %1312 = vmatprep.mubr.bf16.mxu1 %v2814_v42 }
 0x19b   :  { %2180 = vmatpush2.bf16.msra.mxu0 %v2984_v14  ;;  %2303 = vmatpush2.bf16.msra.mxu1 %v2987_v62 }
 0x19c   :  { %2181 = vmatprep.subr.bf16.mxu0 %v2992_v7  ;;  %2304 = vmatprep.subr.bf16.mxu1 %v2995_v20 }
 0x19f   :  { %2182 = vmatpush2.bf16.msra.mxu0 %v2990_v25  ;;  %2305 = vmatpush2.bf16.msra.mxu1 %v2993_v63 }
 0x1a0   :  { %2183 = vmatprep.subr.bf16.mxu0 %v2998_v46  ;;  %2306 = vmatprep.subr.bf16.mxu1 %v3001_v47 }
 0x1a1   :  { %1190 = vmatmul.mubr.bf16.gmra.mxu0 %v2813_v57  ;;  %1313 = vmatmul.mubr.bf16.gmra.mxu1 %v2813_v57 }
 0x1a2   :  { %1199 = vmatprep.mubr.bf16.mxu0 %v2816_v32  ;;  %1322 = vmatprep.mubr.bf16.mxu1 %v2816_v32 }
 0x1a3   :  { %2184 = vmatpush2.bf16.msra.mxu0 %v2996_v5  ;;  %2307 = vmatpush2.bf16.msra.mxu1 %v2999_v33 }
 0x1a4   :  { %2185 = vmatprep.subr.bf16.mxu0 %v3004_v34  ;;  %2308 = vmatprep.subr.bf16.mxu1 %v3007_v38 }
 0x1a7   :  { %2186 = vmatpush2.bf16.msra.mxu0 %v3002_v21  ;;  %2309 = vmatpush2.bf16.msra.mxu1 %v3005_v52 }
 0x1a8   :  { %2187 = vmatprep.subr.bf16.mxu0 %v3010_v0  ;;  %2310 = vmatprep.subr.bf16.mxu1 %v3013_v19 }
 0x1a9   :  { %1200 = vmatmul.mubr.bf16.gmra.mxu0 %v2815_v58  ;;  %1323 = vmatmul.mubr.bf16.gmra.mxu1 %v2815_v58 }
 0x1aa   :  { %1209 = vmatprep.mubr.bf16.mxu0 %v2818_v36  ;;  %1332 = vmatprep.mubr.bf16.mxu1 %v2818_v36 }
 0x1ab   :  { %2188 = vmatpush2.bf16.msra.mxu0 %v3008_v60  ;;  %2311 = vmatpush2.bf16.msra.mxu1 %v3011_v31 }
 0x1ac   :  { %2189 = vmatprep.subr.bf16.mxu0 %v3016_v27  ;;  %2312 = vmatprep.subr.bf16.mxu1 %v3019_v40 }
 0x1af   :  { %2190 = vmatpush2.bf16.msra.mxu0 %v3014_v50  ;;  %2313 = vmatpush2.bf16.msra.mxu1 %v3017_v43 }
 0x1b1   :  { %1210 = vmatmul.mubr.bf16.gmra.mxu0 %v2817_v48  ;;  %1333 = vmatmul.mubr.bf16.gmra.mxu1 %v2817_v48 }
 0x231   :  { %v1131_v10 = vpop.f32.mrf.mxu0  ;;  %v1254_v3 = vpop.f32.mrf.mxu1 }
 0x232   :  { %v1132_v30 = vadd.f32 %v1131_v10, %v3766_v18  ;;  %v1255_v42 = vadd.f32 %v1254_v3, %v3768_v55 }
 0x233   :  { %v1133_v9 = vpop.f32.mrf.mxu0  ;;  %v1256_v28 = vpop.f32.mrf.mxu1 }
 0x234   :  { %v1134_v2 = vadd.f32 %v1133_v9, %v3772_v39  ;;  %v1257_v41 = vadd.f32 %v1256_v28, %v3774_v13  ;;  %v1415_v57 = vmul.f32 0.70710677, %v1132_v30  ;;  %v1417_v45 = vmul.f32 0.70710677, %v1255_v42 }
 0x235   :  { %v1135_v23 = vpop.f32.mrf.mxu0  ;;  %v1258_v12 = vpop.f32.mrf.mxu1  ;;  %v1343_v27 = vmul.f32 0.5, %v1132_v30  ;;  %v3793_v40 = vmul.f32 0.5, %v1255_v42 }
 0x236   :  { %v1136_v32 = vadd.f32 %v1135_v23, %v3766_v18  ;;  %v1416_v15 = vmul.f32 0.70710677, %v1134_v2  ;;  %v1259_v8 = vadd.f32 %v1258_v12, %v3768_v55  ;;  %v1418_v29 = vmul.f32 0.70710677, %v1257_v41 }
 0x237   :  { %v1137_v37 = vpop.f32.mrf.mxu0  ;;  %v1260_v17 = vpop.f32.mrf.mxu1  ;;  %3056 = verf.f32 %v1415_v57  ;;  %v3795_v50 = vmul.f32 0.5, %v1134_v2  ;;  %v3801_v44 = vmul.f32 0.5, %v1257_v41 }
 0x238   :  { %v1419_v26 = vmul.f32 0.70710677, %v1136_v32  ;;  %v1138_v35 = vadd.f32 %v1137_v37, %v3772_v39  ;;  %3058 = verf.f32 %v1417_v45  ;;  %v1261_v48 = vadd.f32 %v1260_v17, %v3774_v13 }
 0x239   :  { %v1141_v16 = vpop.f32.mrf.mxu0  ;;  %v1264_v53 = vpop.f32.mrf.mxu1  ;;  %3060 = verf.f32 %v1416_v15  ;;  %v1421_v49 = vmul.f32 0.70710677, %v1259_v8  ;;  %v3804_v3 = vmul.f32 0.5, %v1136_v32  ;;  %v3806_v9 = vmul.f32 0.5, %v1259_v8 }
 0x23a   :  { %v1142_v51 = vadd.f32 %v1141_v16, %v3766_v18  ;;  %3062 = verf.f32 %v1418_v29  ;;  %v1265_v11 = vadd.f32 %v1264_v53, %v3768_v55  ;;  %v1420_v62 = vmul.f32 0.70710677, %v1138_v35 }
 0x23b   :  { %v1143_v58 = vpop.f32.mrf.mxu0  ;;  %v1266_v36 = vpop.f32.mrf.mxu1  ;;  %3064 = verf.f32 %v1419_v26  ;;  %v1422_v20 = vmul.f32 0.70710677, %v1261_v48  ;;  %v3812_v12 = vmul.f32 0.5, %v1138_v35  ;;  %v3814_v2 = vmul.f32 0.5, %v1261_v48 }
 0x23c   :  { %v1144_v7 = vadd.f32 %v1143_v58, %v3772_v39  ;;  %v1267_v25 = vadd.f32 %v1266_v36, %v3774_v13  ;;  %3066 = verf.f32 %v1421_v49  ;;  %v1423_v47 = vmul.f32 0.70710677, %v1142_v51 }
 0x23d   :  { %v1145_v22 = vpop.f32.mrf.mxu0  ;;  %v1268_v61 = vpop.f32.mrf.mxu1  ;;  %v1425_v5 = vmul.f32 0.70710677, %v1265_v11  ;;  %3068 = verf.f32 %v1420_v62  ;;  %v3817_v57 = vmul.f32 0.5, %v1142_v51  ;;  %v3819_v32 = vmul.f32 0.5, %v1265_v11 }
 0x23e   :  { %v1424_v38 = vmul.f32 0.70710677, %v1144_v7  ;;  %v1146_v21 = vadd.f32 %v1145_v22, %v3766_v18  ;;  %3070 = verf.f32 %v1422_v20  ;;  %v1426_v52 = vmul.f32 0.70710677, %v1267_v25 }
 0x23f   :  { %v1147_v24 = vpop.f32.mrf.mxu0  ;;  %v1270_v14 = vpop.f32.mrf.mxu1  ;;  %v1269_v0 = vadd.f32 %v1268_v61, %v3768_v55  ;;  %3072 = verf.f32 %v1423_v47  ;;  %v3821_v45 = vmul.f32 0.5, %v1144_v7  ;;  %v3828_v29 = vmul.f32 0.5, %v1267_v25 }
 0x240   :  { %v1148_v31 = vadd.f32 %v1147_v24, %v3772_v39  ;;  %3074 = verf.f32 %v1425_v5  ;;  %v1427_v4 = vmul.f32 0.70710677, %v1146_v21  ;;  %v1271_v1 = vadd.f32 %v1270_v14, %v3774_v13 }
 0x241   :  { %v1151_v63 = vpop.f32.mrf.mxu0  ;;  %v1274_v46 = vpop.f32.mrf.mxu1  ;;  %3076 = verf.f32 %v1424_v38  ;;  %v1429_v28 = vmul.f32 0.70710677, %v1269_v0  ;;  %v3830_v58 = vmul.f32 0.5, %v1146_v21  ;;  %v3832_v48 = vmul.f32 0.5, %v1269_v0 }
 0x242   :  { %3078 = verf.f32 %v1426_v52  ;;  %v1428_v41 = vmul.f32 0.70710677, %v1148_v31  ;;  %v1152_v37 = vadd.f32 %v1151_v63, %v3766_v18  ;;  %v1275_v16 = vadd.f32 %v1274_v46, %v3768_v55 }
 0x243   :  { %v1153_v33 = vpop.f32.mrf.mxu0  ;;  %v1276_v34 = vpop.f32.mrf.mxu1  ;;  %3080 = verf.f32 %v1427_v4  ;;  %v1430_v36 = vmul.f32 0.70710677, %v1271_v1  ;;  %v3839_v7 = vmul.f32 0.5, %v1148_v31  ;;  %v3846_v5 = vmul.f32 0.5, %v1271_v1 }
 0x244   :  { %v3057_v10 = vpop.eup %3056  ;;  %3082 = verf.f32 %v1429_v28  ;;  %v1154_v22 = vadd.f32 %v1153_v33, %v3772_v39  ;;  %v1431_v24 = vmul.f32 0.70710677, %v1152_v37  ;;  %v1433_v20 = vmul.f32 0.70710677, %v1275_v16 }
 0x245   :  { %v1155_v19 = vpop.f32.mrf.mxu0  ;;  %v3790_v60 = vpop.f32.mrf.mxu1  ;;  %v1559_v35 = vadd.f32 1.0, %v3057_v10  ;;  %3084 = verf.f32 %v1428_v41  ;;  %v1277_v25 = vadd.f32 %v1276_v34, %v3774_v13  ;;  %v3851_v52 = vmul.f32 0.5, %v1152_v37 }
 0x246   :  { %v3059_v23 = vpop.eup %3058  ;;  %3086 = verf.f32 %v1430_v36  ;;  %v1156_v33 = vadd.f32 %v1155_v19, %v3766_v18  ;;  %v3853_v0 = vmul.f32 0.5, %v1275_v16  ;;  %v1432_v31 = vmul.f32 0.70710677, %v1154_v22 }
 0x247   :  { %v3797_v43 = vpop.f32.mrf.mxu0  ;;  %v3799_v56 = vpop.f32.mrf.mxu1  ;;  %v1561_v51 = vadd.f32 1.0, %v3059_v23  ;;  %v3849_v21 = vmul.f32 %v1559_v35, %v1343_v27  ;;  %3088 = verf.f32 %v1431_v24  ;;  %v1434_v41 = vmul.f32 0.70710677, %v1277_v25 }
 0x248   :  { %v3061_v17 = vpop.eup %3060  ;;  %3090 = verf.f32 %v1433_v20  ;;  %v1279_v37 = vadd.f32 %v3790_v60, %v3768_v55  ;;  %v1435_v36 = vmul.f32 0.70710677, %v1156_v33  ;;  %v1281_v60 = vadd.f32 %v3799_v56, %v3774_v13 }
 0x249   :  { %v3808_v30 = vpop.f32.mrf.mxu0  ;;  %v3810_v42 = vpop.f32.mrf.mxu1  ;;  %v1560_v11 = vadd.f32 1.0, %v3061_v17  ;;  %v3860_v28 = vmul.f32 %v1561_v51, %v3793_v40  ;;  %3092 = verf.f32 %v1432_v31  ;;  %v3881_v51 = vmul.f32 0.5, %v1277_v25 }
 0x24a   :  { %v3063_v8 = vpop.eup %3062  ;;  %v3892_v20 = vmul.f32 0.5, %v1156_v33  ;;  %3094 = verf.f32 %v1434_v41  ;;  %v3896_v25 = vadd.f32 %v3808_v30, %v3766_v18  ;;  %v3900_v31 = vadd.f32 %v3810_v42, %v3768_v55 }
 0x24b   :  { %v3824_v53 = vpop.f32.mrf.mxu0  ;;  %v3826_v15 = vpop.f32.mrf.mxu1  ;;  %v1562_v62 = vadd.f32 1.0, %v3063_v8  ;;  %v3863_v1 = vmul.f32 %v1560_v11, %v3795_v50  ;;  %v3877_v50 = vmul.f32 0.5, %v1154_v22 }
 0x24c   :  { %v3065_v26 = vpop.eup %3064  ;;  %3096 = verf.f32 %v1435_v36 }
 0x24d   :  { %v3835_v61 = vpop.f32.mrf.mxu0  ;;  %v3837_v49 = vpop.f32.mrf.mxu1  ;;  %v1563_v47 = vadd.f32 1.0, %v3065_v26  ;;  %v3866_v23 = vmul.f32 %v1562_v62, %v3801_v44  ;;  %v1158_v44 = vadd.f32 %v3797_v43, %v3772_v39 }
 0x24e   :  { %v3067_v14 = vpop.eup %3066 }
 0x24f   :  { %v3842_v63 = vpop.f32.mrf.mxu0  ;;  %v3844_v46 = vpop.f32.mrf.mxu1  ;;  %v1565_v19 = vadd.f32 1.0, %v3067_v14  ;;  %v3875_v8 = vmul.f32 %v1563_v47, %v3804_v3  ;;  %v1437_v47 = vmul.f32 0.70710677, %v1279_v37 }
 0x250   :  { %v3069_v38 = vpop.eup %3068 }
 0x251   :  { %v3855_v4 = vpop.f32.mrf.mxu0  ;;  %v3857_v34 = vpop.f32.mrf.mxu1  ;;  %v1564_v35 = vadd.f32 1.0, %v3069_v38  ;;  %v3890_v22 = vmul.f32 %v1565_v19, %v3806_v9  ;;  %v1436_v38 = vmul.f32 0.70710677, %v1158_v44  ;;  %3098 = verf.f32 %v1437_v47 }
 0x252   :  { %v3071_v10 = vpop.eup %3070 }
 0x253   :  { %v3073_v27 = vpop.eup %3072  ;;  %v3870_v17 = vpop.f32.mrf.mxu0  ;;  %v1566_v14 = vadd.f32 1.0, %v3071_v10  ;;  %v1739_v10 = vpack.c.bf16 %v3875_v8, %v3849_v21  ;;  %v1636_v33 = vmul.f32 %v1564_v35, %v3812_v12  ;;  %v1741_v36 = vpack.c.bf16 %v3890_v22, %v3860_v28 }
 0x254   :  { %v3872_v16 = vpop.f32.mrf.mxu1  ;;  %v3075_v40 = vpop.eup %3074  ;;  %v1567_v62 = vadd.f32 1.0, %v3073_v27  ;;  %v1438_v27 = vmul.f32 0.70710677, %v1281_v60  ;;  %v3917_v21 = vadd.f32 %v3824_v53, %v3772_v39  ;;  %v1439_v35 = vmul.f32 0.70710677, %v3896_v25 }
 0x255   :  { %v3077_v26 = vpop.eup %3076  ;;  %v3885_v11 = vpop.f32.mrf.mxu0  ;;  %v1569_v43 = vadd.f32 1.0, %v3075_v40  ;;  %3100 = verf.f32 %v1436_v38  ;;  %v1441_v28 = vmul.f32 0.70710677, %v3900_v31 }
 0x256   :  { %v3887_v24 = vpop.f32.mrf.mxu1  ;;  %v3079_v3 = vpop.eup %3078  ;;  %v1568_v56 = vadd.f32 1.0, %v3077_v26  ;;  %v1638_v26 = vmul.f32 %v1566_v14, %v3814_v2  ;;  %v3913_v42 = vmul.f32 %v1567_v62, %v3817_v57  ;;  %3102 = verf.f32 %v1438_v27 }
 0x257   :  { %v3081_v9 = vpop.eup %3080  ;;  %v1570_v19 = vadd.f32 1.0, %v3079_v3  ;;  %v3905_v41 = vpop.f32.mrf.mxu0  ;;  %v3920_v8 = vmul.f32 %v1569_v43, %v3819_v32  ;;  %v3925_v3 = vadd.f32 %v3826_v15, %v3774_v13  ;;  %v3934_v32 = vmul.f32 0.5, %v1279_v37 }
 0x258   :  { %v3907_v40 = vpop.f32.mrf.mxu1  ;;  %v3083_v30 = vpop.eup %3082  ;;  %v3928_v2 = vmul.f32 %v1568_v56, %v3821_v45  ;;  %v1571_v57 = vadd.f32 1.0, %v3081_v9  ;;  %v3938_v14 = vadd.f32 %v3835_v61, %v3766_v18  ;;  %v1440_v47 = vmul.f32 0.70710677, %v3917_v21 }
 0x259   :  { %v3085_v12 = vpop.eup %3084  ;;  %v3932_v22 = vmul.f32 %v1570_v19, %v3828_v29  ;;  %v3940_v15 = vpop.f32.mrf.mxu0  ;;  %v1573_v45 = vadd.f32 1.0, %v3083_v30  ;;  %v1740_v56 = vpack.c.bf16 %v1636_v33, %v3863_v1  ;;  %3104 = verf.f32 %v1439_v35 }
 0x25a   :  { %v3087_v53 = vpop.eup %3086  ;;  %v3942_v62 = vpop.f32.mrf.mxu1  ;;  %v1572_v43 = vadd.f32 1.0, %v3085_v12  ;;  %v1442_v29 = vmul.f32 0.70710677, %v3925_v3  ;;  %v1289_v37 = vadd.f32 %v3837_v49, %v3768_v55  ;;  %v1742_v61 = vpack.c.bf16 %v1638_v26, %v3866_v23 }
 0x25b   :  { %v3089_v38 = vpop.eup %3088  ;;  %v1574_v19 = vadd.f32 1.0, %v3087_v53  ;;  %v3950_v27 = vmul.f32 0.5, %v1158_v44  ;;  %3106 = verf.f32 %v1441_v28  ;;  %v3954_v30 = vadd.f32 %v3842_v63, %v3772_v39  ;;  %2191 = vmatprep.mubr.bf16.mxu0 %v1740_v56  ;;  %v3964_v23 = vpop.f32.mrf.mxu0 }
 0x25c   :  { %v3091_v9 = vpop.eup %3090  ;;  %v3957_v1 = vmul.f32 %v1571_v57, %v3830_v58  ;;  %v3959_v33 = vmul.f32 0.5, %v1281_v60  ;;  %v1443_v12 = vmul.f32 0.70710677, %v3938_v14  ;;  %v1291_v49 = vadd.f32 %v3844_v46, %v3774_v13  ;;  %2314 = vmatprep.mubr.bf16.mxu1 %v1742_v61  ;;  %2192 = vmatmul.mubr.bf16.vlgmr.msra.gmra.mxu0 %v1739_v10  ;;  %v3966_v44 = vpop.f32.mrf.mxu1 }
 0x25d   :  { %v3093_v26 = vpop.eup %3092  ;;  %v3969_v63 = vmul.f32 %v1573_v45, %v3832_v48  ;;  %v1575_v35 = vadd.f32 1.0, %v3089_v38  ;;  %3108 = verf.f32 %v1440_v47  ;;  %v1172_v58 = vadd.f32 %v3855_v4, %v3766_v18  ;;  %2315 = vmatmul.mubr.bf16.vlgmr.msra.gmra.mxu1 %v1741_v36  ;;  %v3983_v36 = vpop.f32.mrf.mxu0 }
 0x25e   :  { %v1644_v60 = vmul.f32 %v1572_v43, %v3839_v7  ;;  %v1577_v57 = vadd.f32 1.0, %v3091_v9  ;;  %3110 = verf.f32 %v1442_v29  ;;  %v1445_v46 = vmul.f32 0.70710677, %v1289_v37  ;;  %v3095_v10 = vpop.eup %3094  ;;  %v3985_v43 = vpop.f32.mrf.mxu1 }
 0x25f   :  { %v1646_v28 = vmul.f32 %v1574_v19, %v3846_v5  ;;  %v3976_v53 = vmul.f32 0.5, %v3896_v25  ;;  %v1444_v48 = vmul.f32 0.70710677, %v3954_v30  ;;  %v1295_v45 = vadd.f32 %v3857_v34, %v3768_v55  ;;  %v3097_v47 = vpop.eup %3096 }
 0x260   :  { %v1576_v56 = vadd.f32 1.0, %v3093_v26  ;;  %3112 = verf.f32 %v1443_v12  ;;  %v1446_v4 = vmul.f32 0.70710677, %v1291_v49  ;;  %v1174_v7 = vadd.f32 %v3870_v17, %v3772_v39  ;;  %v3099_v9 = vpop.eup %3098 }
 0x261   :  { %v3988_v5 = vmul.f32 %v1575_v35, %v3851_v52  ;;  %v3991_v25 = vmul.f32 0.5, %v3900_v31  ;;  %v1447_v38 = vmul.f32 0.70710677, %v1172_v58  ;;  %v1297_v34 = vadd.f32 %v3872_v16, %v3774_v13  ;;  %v4010_v35 = vpop.f32.mrf.mxu0 }
 0x262   :  { %v3996_v29 = vmul.f32 %v1577_v57, %v3853_v0  ;;  %v1578_v61 = vadd.f32 1.0, %v3095_v10  ;;  %v3999_v17 = vmul.f32 0.5, %v3917_v21  ;;  %3114 = verf.f32 %v1445_v46  ;;  %v3101_v12 = vpop.eup %3100  ;;  %v4012_v21 = vpop.f32.mrf.mxu1 }
 0x263   :  { %v1579_v19 = vadd.f32 1.0, %v3097_v47  ;;  %v4002_v52 = vmul.f32 0.5, %v3925_v3  ;;  %3116 = verf.f32 %v1444_v48  ;;  %v1449_v31 = vmul.f32 0.70710677, %v1295_v45  ;;  %v3103_v57 = vpop.eup %3102 }
 0x264   :  { %v4005_v26 = vmul.f32 %v1576_v56, %v3877_v50  ;;  %v4008_v16 = vmul.f32 0.5, %v3938_v14  ;;  %3118 = verf.f32 %v1446_v4  ;;  %v1448_v0 = vmul.f32 0.70710677, %v1174_v7 }
 0x265   :  { %v4014_v46 = vmul.f32 0.5, %v1289_v37  ;;  %3120 = verf.f32 %v1447_v38  ;;  %v1450_v3 = vmul.f32 0.70710677, %v1297_v34  ;;  %v1744_v10 = vpack.c.bf16 %v1644_v60, %v3928_v2 }
 0x266   :  { %v4018_v48 = vmul.f32 %v1578_v61, %v3881_v51  ;;  %v1581_v50 = vadd.f32 1.0, %v3099_v9  ;;  %v1176_v14 = vadd.f32 %v3885_v11, %v3766_v18  ;;  %v1746_v47 = vpack.c.bf16 %v1646_v28, %v3932_v22  ;;  %v3105_v56 = vpop.eup %3104  ;;  %v4033_v22 = vpop.f32.mrf.mxu0 }
 0x267   :  { %v4024_v4 = vmul.f32 %v1579_v19, %v3892_v20  ;;  %v4027_v37 = vmul.f32 0.5, %v3954_v30  ;;  %v4029_v38 = vmul.f32 0.5, %v1291_v49  ;;  %3122 = verf.f32 %v1449_v31  ;;  %2201 = vmatprep.mubr.bf16.mxu0 %v1744_v10  ;;  %v4035_v28 = vpop.f32.mrf.mxu1 }
 0x268   :  { %v3107_v2 = vpop.eup %3106  ;;  %v1580_v51 = vadd.f32 1.0, %v3101_v12  ;;  %v1582_v60 = vadd.f32 1.0, %v3103_v57  ;;  %3124 = verf.f32 %v1448_v0  ;;  %v1299_v11 = vadd.f32 %v3887_v24, %v3768_v55  ;;  %2324 = vmatprep.mubr.bf16.mxu1 %v1746_v47  ;;  %v4060_v10 = vpop.f32.mrf.mxu0 }
 0x269   :  { %v4037_v20 = vmul.f32 0.5, %v1172_v58  ;;  %v4039_v30 = vmul.f32 0.5, %v1295_v45  ;;  %3126 = verf.f32 %v1450_v3  ;;  %v1178_v49 = vadd.f32 %v3905_v41, %v3772_v39 }
 0x26a   :  { %v3109_v61 = vpop.eup %3108  ;;  %v4044_v9 = vmul.f32 %v1581_v50, %v3934_v32  ;;  %v1451_v19 = vmul.f32 0.70710677, %v1176_v14  ;;  %v1301_v24 = vadd.f32 %v3907_v40, %v3774_v13  ;;  %v1743_v31 = vpack.c.bf16 %v3957_v1, %v3913_v42  ;;  %v4062_v42 = vpop.f32.mrf.mxu1 }
 0x26b   :  { %v3111_v12 = vpop.eup %3110  ;;  %v1583_v58 = vadd.f32 1.0, %v3105_v56  ;;  %v1585_v0 = vadd.f32 1.0, %v3107_v2  ;;  %v1182_v45 = vadd.f32 %v3940_v15, %v3766_v18  ;;  %v1745_v41 = vpack.c.bf16 %v3969_v63, %v3920_v8 }
 0x26c   :  { %v1652_v57 = vmul.f32 %v1580_v51, %v3950_v27  ;;  %v4056_v32 = vmul.f32 %v1582_v60, %v3959_v33  ;;  %v4058_v3 = vmul.f32 0.5, %v1174_v7  ;;  %v1453_v40 = vmul.f32 0.70710677, %v1299_v11  ;;  %2202 = vmatmul.mubr.bf16.gmra.mxu0 %v1743_v31  ;;  %v4082_v31 = vpop.f32.mrf.mxu0 }
 0x26d   :  { %v3113_v1 = vpop.eup %3112  ;;  %v1584_v50 = vadd.f32 1.0, %v3109_v61  ;;  %v4064_v47 = vmul.f32 0.5, %v1297_v34  ;;  %v4066_v15 = vmul.f32 0.5, %v1176_v14  ;;  %v1452_v8 = vmul.f32 0.70710677, %v1178_v49  ;;  %2325 = vmatmul.mubr.bf16.gmra.mxu1 %v1745_v41 }
 0x26e   :  { %v1586_v27 = vadd.f32 1.0, %v3111_v12  ;;  %3128 = verf.f32 %v1451_v19  ;;  %v1454_v33 = vmul.f32 0.70710677, %v1301_v24  ;;  %v1305_v63 = vadd.f32 %v3942_v62, %v3768_v55  ;;  %v4084_v62 = vpop.f32.mrf.mxu1 }
 0x26f   :  { %v3115_v7 = vpop.eup %3114  ;;  %v4071_v56 = vmul.f32 %v1583_v58, %v3976_v53  ;;  %v4074_v2 = vmul.f32 %v1585_v0, %v3991_v25  ;;  %v4076_v51 = vmul.f32 0.5, %v1299_v11  ;;  %v1455_v34 = vmul.f32 0.70710677, %v1182_v45 }
 0x270   :  { %v3117_v14 = vpop.eup %3116  ;;  %v1587_v60 = vadd.f32 1.0, %v3113_v1  ;;  %3130 = verf.f32 %v1453_v40  ;;  %v4078_v61 = vmul.f32 0.5, %v1178_v49  ;;  %v1184_v19 = vadd.f32 %v3964_v23, %v3772_v39 }
 0x271   :  { %v3119_v53 = vpop.eup %3118  ;;  %v4087_v12 = vmul.f32 %v1584_v50, %v3999_v17  ;;  %3132 = verf.f32 %v1452_v8  ;;  %v4089_v25 = vmul.f32 0.5, %v1301_v24  ;;  %v1748_v11 = vpack.c.bf16 %v1652_v57, %v4005_v26  ;;  %v1197_v50 = vpop.f32.mrf.mxu0 }
 0x272   :  { %v3121_v58 = vpop.eup %3120  ;;  %v4093_v49 = vmul.f32 %v1586_v27, %v4002_v52  ;;  %3134 = verf.f32 %v1454_v33  ;;  %v1457_v0 = vmul.f32 0.70710677, %v1305_v63  ;;  %v1307_v23 = vadd.f32 %v3966_v44, %v3774_v13  ;;  %v1320_v8 = vpop.f32.mrf.mxu1 }
 0x273   :  { %v1589_v41 = vadd.f32 1.0, %v3115_v7  ;;  %v1588_v40 = vadd.f32 1.0, %v3117_v14  ;;  %v4097_v1 = vmul.f32 0.5, %v1182_v45  ;;  %3136 = verf.f32 %v1455_v34  ;;  %2211 = vmatprep.mubr.bf16.mxu0 %v1748_v11 }
 0x274   :  { %v3123_v17 = vpop.eup %3122  ;;  %v4100_v24 = vmul.f32 %v1587_v60, %v4008_v16  ;;  %v4102_v26 = vmul.f32 0.5, %v1305_v63  ;;  %v1456_v57 = vmul.f32 0.70710677, %v1184_v19  ;;  %v1186_v52 = vadd.f32 %v3983_v36, %v3766_v18 }
 0x275   :  { %v3125_v27 = vpop.eup %3124  ;;  %v1590_v44 = vadd.f32 1.0, %v3119_v53  ;;  %v1591_v33 = vadd.f32 1.0, %v3121_v58  ;;  %v1309_v45 = vadd.f32 %v3985_v43, %v3768_v55  ;;  %v1750_v7 = vpack.c.bf16 %v4056_v32, %v4018_v48 }
 0x276   :  { %v3127_v34 = vpop.eup %3126  ;;  %3138 = verf.f32 %v1457_v0  ;;  %v1458_v16 = vmul.f32 0.70710677, %v1307_v23  ;;  %v1188_v63 = vadd.f32 %v4010_v35, %v3772_v39  ;;  %v1747_v36 = vpack.c.bf16 %v4024_v4, %v3988_v5  ;;  %v4122_v35 = vpop.f32.mrf.mxu0 }
 0x277   :  { %v4115_v14 = vmul.f32 %v1589_v41, %v4014_v46  ;;  %v1660_v60 = vmul.f32 %v1588_v40, %v4027_v37  ;;  %v1311_v43 = vadd.f32 %v4012_v21, %v3774_v13  ;;  %2334 = vmatprep.mubr.bf16.mxu1 %v1750_v7  ;;  %v1749_v48 = vpack.c.bf16 %v4044_v9, %v3996_v29  ;;  %v4124_v5 = vpop.f32.mrf.mxu1 }
 0x278   :  { %v1593_v32 = vadd.f32 1.0, %v3123_v17  ;;  %v1592_v53 = vadd.f32 1.0, %v3125_v27  ;;  %3140 = verf.f32 %v1456_v57  ;;  %v1459_v11 = vmul.f32 0.70710677, %v1186_v52  ;;  %2212 = vmatmul.mubr.bf16.gmra.mxu0 %v1747_v36 }
 0x279   :  { %v1662_v46 = vmul.f32 %v1590_v44, %v4029_v38  ;;  %v1594_v4 = vadd.f32 1.0, %v3127_v34  ;;  %v4127_v37 = vmul.f32 0.5, %v1184_v19  ;;  %v1461_v58 = vmul.f32 0.70710677, %v1309_v45  ;;  %2335 = vmatmul.mubr.bf16.gmra.mxu1 %v1749_v48  ;;  %v1326_v57 = vpop.f32.mrf.mxu1 }
 0x27a   :  { %v4130_v21 = vmul.f32 %v1591_v33, %v4037_v20  ;;  %3142 = verf.f32 %v1458_v16  ;;  %v1460_v29 = vmul.f32 0.70710677, %v1188_v63  ;;  %v4134_v9 = vadd.f32 %v4033_v22, %v3766_v18 }
 0x27b   :  { %v3129_v0 = vpop.eup %3128  ;;  %v4136_v41 = vmul.f32 0.5, %v1307_v23  ;;  %v4138_v40 = vmul.f32 0.5, %v1186_v52  ;;  %v1462_v38 = vmul.f32 0.70710677, %v1311_v43  ;;  %v4142_v19 = vadd.f32 %v4060_v10, %v3772_v39  ;;  %v1203_v23 = vpop.f32.mrf.mxu0 }
 0x27c   :  { %v4145_v17 = vmul.f32 %v1593_v32, %v4039_v30  ;;  %v4148_v20 = vmul.f32 %v1592_v53, %v4058_v3  ;;  %3144 = verf.f32 %v1459_v11  ;;  %v4152_v22 = vadd.f32 %v4062_v42, %v3774_v13 }
 0x27d   :  { %v3131_v52 = vpop.eup %3130  ;;  %v4155_v27 = vmul.f32 %v1594_v4, %v4064_v47  ;;  %3146 = verf.f32 %v1461_v58  ;;  %v4158_v10 = vadd.f32 %v1197_v50, %v3772_v39  ;;  %v1752_v30 = vpack.c.bf16 %v1660_v60, %v4087_v12  ;;  %v1205_v48 = vpop.f32.mrf.mxu0 }
 0x27e   :  { %v3133_v44 = vpop.eup %3132  ;;  %v1595_v3 = vadd.f32 1.0, %v3129_v0  ;;  %3148 = verf.f32 %v1460_v29  ;;  %v1463_v33 = vmul.f32 0.70710677, %v4134_v9  ;;  %v4163_v42 = vadd.f32 %v1320_v8, %v3774_v13 }
 0x27f   :  { %v3135_v7 = vpop.eup %3134  ;;  %v4165_v34 = vmul.f32 0.5, %v1309_v45  ;;  %3150 = verf.f32 %v1462_v38  ;;  %v4169_v47 = vadd.f32 %v4035_v28, %v3768_v55  ;;  %v1464_v50 = vmul.f32 0.70710677, %v4142_v19  ;;  %2221 = vmatprep.mubr.bf16.mxu0 %v1752_v30  ;;  %v1328_v45 = vpop.f32.mrf.mxu1 }
 0x280   :  { %v3137_v12 = vpop.eup %3136  ;;  %v1597_v16 = vadd.f32 1.0, %v3131_v52  ;;  %v4172_v36 = vmul.f32 0.5, %v1188_v63  ;;  %v1466_v60 = vmul.f32 0.70710677, %v4152_v22  ;;  %v1196_v8 = vadd.f32 %v4082_v31, %v3766_v18 }
 0x281   :  { %v4177_v32 = vmul.f32 0.5, %v1311_v43  ;;  %v1319_v28 = vadd.f32 %v4084_v62, %v3768_v55  ;;  %v1468_v53 = vmul.f32 0.70710677, %v4158_v10  ;;  %v1754_v11 = vpack.c.bf16 %v1662_v46, %v4093_v49  ;;  %v1207_v46 = vpop.f32.mrf.mxu0  ;;  %v1330_v52 = vpop.f32.mrf.mxu1 }
 0x282   :  { %v1596_v4 = vadd.f32 1.0, %v3133_v44  ;;  %3152 = verf.f32 %v1463_v33  ;;  %v1470_v63 = vmul.f32 0.70710677, %v4163_v42  ;;  %v1751_v58 = vpack.c.bf16 %v4100_v24, %v4071_v56 }
 0x283   :  { %v3139_v29 = vpop.eup %3138  ;;  %v1598_v31 = vadd.f32 1.0, %v3135_v7  ;;  %v1599_v0 = vadd.f32 1.0, %v3137_v12  ;;  %v1465_v43 = vmul.f32 0.70710677, %v4169_v47  ;;  %3154 = verf.f32 %v1464_v50  ;;  %2344 = vmatprep.mubr.bf16.mxu1 %v1754_v11  ;;  %v4215_v12 = vpop.f32.mrf.mxu1 }
 0x284   :  { %v4188_v62 = vmul.f32 %v1595_v3, %v4066_v15  ;;  %v4191_v38 = vmul.f32 %v1597_v16, %v4076_v51  ;;  %3156 = verf.f32 %v1466_v60  ;;  %v1467_v49 = vmul.f32 0.70710677, %v1196_v8  ;;  %2222 = vmatmul.mubr.bf16.gmra.mxu0 %v1751_v58 }
 0x285   :  { %v3141_v30 = vpop.eup %3140  ;;  %v1469_v56 = vmul.f32 0.70710677, %v1319_v28  ;;  %3158 = verf.f32 %v1468_v53  ;;  %v1753_v24 = vpack.c.bf16 %v4115_v14, %v4074_v2  ;;  %v4196_v44 = vadd.f32 %v1203_v23, %v3772_v39 }
 0x286   :  { %v1668_v15 = vmul.f32 %v1596_v4, %v4078_v61  ;;  %v1601_v3 = vadd.f32 1.0, %v3139_v29  ;;  %3160 = verf.f32 %v1470_v63  ;;  %v4200_v51 = vadd.f32 %v1326_v57, %v3774_v13  ;;  %v4213_v57 = vpop.f32.mrf.mxu0 }
 0x287   :  { %v3143_v33 = vpop.eup %3142  ;;  %v1670_v7 = vmul.f32 %v1598_v31, %v4089_v25  ;;  %v4204_v50 = vmul.f32 %v1599_v0, %v4097_v1  ;;  %3162 = verf.f32 %v1465_v43  ;;  %2345 = vmatmul.mubr.bf16.gmra.mxu1 %v1753_v24  ;;  %v1472_v2 = vmul.f32 0.70710677, %v4196_v44 }
 0x288   :  { %v1600_v14 = vadd.f32 1.0, %v3141_v30  ;;  %v4208_v23 = vmul.f32 0.5, %v4142_v19  ;;  %v4211_v61 = vmul.f32 0.5, %v4152_v22  ;;  %3164 = verf.f32 %v1467_v49  ;;  %v1213_v43 = vpop.f32.mrf.mxu0  ;;  %v1336_v49 = vpop.f32.mrf.mxu1 }
 0x289   :  { %v3145_v25 = vpop.eup %3144  ;;  %v4217_v16 = vmul.f32 0.5, %v1196_v8  ;;  %3166 = verf.f32 %v1469_v56  ;;  %v4221_v1 = vadd.f32 %v4122_v35, %v3766_v18  ;;  %v1474_v60 = vmul.f32 0.70710677, %v4200_v51 }
 0x28a   :  { %v3147_v19 = vpop.eup %3146  ;;  %v4225_v53 = vmul.f32 %v1601_v3, %v4102_v26  ;;  %v1602_v22 = vadd.f32 1.0, %v3143_v33  ;;  %v4229_v11 = vadd.f32 %v4124_v5, %v3768_v55  ;;  %v4232_v4 = vadd.f32 %v1207_v46, %v3772_v39 }
 0x28b   :  { %v3149_v8 = vpop.eup %3148  ;;  %3168 = verf.f32 %v1472_v2  ;;  %v4235_v63 = vadd.f32 %v1205_v48, %v3766_v18  ;;  %v4238_v35 = vadd.f32 %v1330_v52, %v3774_v13  ;;  %v1756_v58 = vpack.c.bf16 %v1668_v15, %v4148_v20 }
 0x28c   :  { %v3151_v26 = vpop.eup %3150  ;;  %v4242_v29 = vmul.f32 %v1600_v14, %v4127_v37  ;;  %v4244_v31 = vmul.f32 0.5, %v1319_v28  ;;  %v4247_v5 = vadd.f32 %v1328_v45, %v3768_v55  ;;  %v1476_v0 = vmul.f32 0.70710677, %v4232_v4 }
 0x28d   :  { %v1603_v48 = vadd.f32 1.0, %v3145_v25  ;;  %v1471_v46 = vmul.f32 0.70710677, %v4221_v1  ;;  %3170 = verf.f32 %v1474_v60  ;;  %v1478_v52 = vmul.f32 0.70710677, %v4238_v35  ;;  %2231 = vmatprep.mubr.bf16.mxu0 %v1756_v58  ;;  %v1215_v25 = vpop.f32.mrf.mxu0 }
 0x28e   :  { %v1605_v20 = vadd.f32 1.0, %v3147_v19  ;;  %v1473_v37 = vmul.f32 0.70710677, %v4229_v11  ;;  %3172 = verf.f32 %v1476_v0  ;;  %v1758_v28 = vpack.c.bf16 %v1670_v7, %v4155_v27  ;;  %v1338_v27 = vpop.f32.mrf.mxu1 }
 0x28f   :  { %v3153_v30 = vpop.eup %3152  ;;  %v1604_v45 = vadd.f32 1.0, %v3149_v8  ;;  %v1606_v56 = vadd.f32 1.0, %v3151_v26  ;;  %v1475_v24 = vmul.f32 0.70710677, %v4235_v63  ;;  %3174 = verf.f32 %v1478_v52  ;;  %v1217_v0 = vpop.f32.mrf.mxu0 }
 0x290   :  { %v3155_v15 = vpop.eup %3154  ;;  %v1396_v3 = vmul.f32 0.5, %v4158_v10  ;;  %v1477_v33 = vmul.f32 0.70710677, %v4247_v5  ;;  %2354 = vmatprep.mubr.bf16.mxu1 %v1758_v28  ;;  %v1755_v2 = vpack.c.bf16 %v4188_v62, %v4130_v21  ;;  %v1757_v14 = vpack.c.bf16 %v4191_v38, %v4145_v17 }
 0x291   :  { %v3157_v7 = vpop.eup %3156  ;;  %v4262_v60 = vmul.f32 %v1602_v22, %v4136_v41  ;;  %v4265_v19 = vmul.f32 %v1603_v48, %v4138_v40  ;;  %v1398_v10 = vmul.f32 0.5, %v4163_v42  ;;  %3176 = verf.f32 %v1471_v46 }
 0x292   :  { %v3159_v8 = vpop.eup %3158  ;;  %v4269_v58 = vmul.f32 %v1605_v20, %v4165_v34  ;;  %3178 = verf.f32 %v1473_v37  ;;  %2232 = vmatmul.mubr.bf16.gmra.mxu0 %v1755_v2  ;;  %2355 = vmatmul.mubr.bf16.gmra.mxu1 %v1757_v14  ;;  %v4272_v21 = vadd.f32 %v1213_v43, %v3772_v39  ;;  %v4275_v17 = vadd.f32 %v1336_v49, %v3774_v13  ;;  %v1340_v43 = vpop.f32.mrf.mxu1 }
 0x293   :  { %v3161_v41 = vpop.eup %3160  ;;  %v1676_v40 = vmul.f32 %v1604_v45, %v4172_v36  ;;  %v1678_v62 = vmul.f32 %v1606_v56, %v4177_v32  ;;  %3180 = verf.f32 %v1475_v24  ;;  %v4280_v42 = vadd.f32 %v1215_v25, %v3766_v18 }
 0x294   :  { %v3163_v34 = vpop.eup %3162  ;;  %v1608_v38 = vadd.f32 1.0, %v3155_v15  ;;  %v1610_v22 = vadd.f32 1.0, %v3157_v7  ;;  %3182 = verf.f32 %v1477_v33  ;;  %v1480_v26 = vmul.f32 0.70710677, %v4272_v21 }
 0x295   :  { %v3165_v48 = vpop.eup %3164  ;;  %v4283_v49 = vadd.f32 1.0, %v3153_v30  ;;  %v1612_v46 = vadd.f32 1.0, %v3159_v8  ;;  %v4287_v36 = vadd.f32 %v4213_v57, %v3766_v18  ;;  %v1482_v32 = vmul.f32 0.70710677, %v4275_v17 }
 0x296   :  { %v3167_v52 = vpop.eup %3166  ;;  %v1614_v20 = vadd.f32 1.0, %v3161_v41  ;;  %v4292_v37 = vadd.f32 %v4215_v12, %v3768_v55  ;;  %v1483_v28 = vmul.f32 0.70710677, %v4280_v42  ;;  %v4296_v45 = vadd.f32 %v1338_v27, %v3768_v55 }
 0x297   :  { %v1404_v30 = vmul.f32 0.5, %v4232_v4  ;;  %3184 = verf.f32 %v1480_v26  ;;  %v4300_v56 = vadd.f32 %v1217_v0, %v3772_v39  ;;  %v4303_v18 = vadd.f32 %v1340_v43, %v3774_v13 }
 0x298   :  { %v3169_v57 = vpop.eup %3168  ;;  %v1680_v24 = vmul.f32 %v1608_v38, %v4208_v23  ;;  %v1682_v12 = vmul.f32 %v1610_v22, %v4211_v61  ;;  %v1611_v15 = vadd.f32 1.0, %v3165_v48  ;;  %v1485_v33 = vmul.f32 0.70710677, %v4296_v45 }
 0x299   :  { %v1613_v2 = vadd.f32 1.0, %v3167_v52  ;;  %v1684_v55 = vmul.f32 %v1612_v46, %v1396_v3  ;;  %3186 = verf.f32 %v1482_v32  ;;  %v1484_v4 = vmul.f32 0.70710677, %v4300_v56 }
 0x29a   :  { %v3171_v14 = vpop.eup %3170  ;;  %v1686_v25 = vmul.f32 %v1614_v20, %v1398_v10  ;;  %v1479_v39 = vmul.f32 0.70710677, %v4287_v36  ;;  %v1481_v13 = vmul.f32 0.70710677, %v4292_v37  ;;  %3188 = verf.f32 %v1483_v28 }
 0x29b   :  { %v3173_v27 = vpop.eup %3172  ;;  %v1616_v7 = vadd.f32 1.0, %v3169_v57  ;;  %3190 = verf.f32 %v1484_v4  ;;  %v1486_v23 = vmul.f32 0.70710677, %v4303_v18  ;;  %v1760_v61 = vpack.c.bf16 %v1676_v40, %v4242_v29 }
 0x29c   :  { %v3175_v8 = vpop.eup %3174  ;;  %v1620_v41 = vadd.f32 1.0, %v3173_v27  ;;  %3192 = verf.f32 %v1485_v33  ;;  %v1762_v3 = vpack.c.bf16 %v1678_v62, %v4262_v60  ;;  %v1759_v10 = vpack.c.bf16 %v4265_v19, %v4204_v50 }
 0x29d   :  { %v1622_v38 = vadd.f32 1.0, %v3175_v8  ;;  %3194 = verf.f32 %v1486_v23  ;;  %2241 = vmatprep.mubr.bf16.mxu0 %v1760_v61  ;;  %v1761_v22 = vpack.c.bf16 %v4269_v58, %v4225_v53  ;;  %v1764_v26 = vpack.c.bf16 %v1684_v55, %v1680_v24 }
 0x29e   :  { %v3177_v0 = vpop.eup %3176  ;;  %v1618_v43 = vadd.f32 1.0, %v3171_v14  ;;  %v1406_v48 = vmul.f32 0.5, %v4238_v35  ;;  %3196 = verf.f32 %v1479_v39  ;;  %2364 = vmatprep.mubr.bf16.mxu1 %v1762_v3  ;;  %2242 = vmatmul.mubr.bf16.gmra.mxu0 %v1759_v10  ;;  %v1766_v29 = vpack.c.bf16 %v1686_v25, %v1682_v12 }
 0x29f   :  { %v3179_v40 = vpop.eup %3178  ;;  %v1609_v60 = vadd.f32 1.0, %v3163_v34  ;;  %v1400_v62 = vmul.f32 0.5, %v4196_v44  ;;  %v1692_v50 = vmul.f32 %v1620_v41, %v1404_v30  ;;  %3198 = verf.f32 %v1481_v13  ;;  %2365 = vmatmul.mubr.bf16.gmra.mxu1 %v1761_v22  ;;  %2251 = vmatprep.mubr.bf16.mxu0 %v1764_v26 }
 0x2a0   :  { %v3181_v19 = vpop.eup %3180  ;;  %v1391_v53 = vmul.f32 0.5, %v4134_v9  ;;  %v1683_v58 = vmul.f32 %v1611_v15, %v4217_v16  ;;  %v1402_v46 = vmul.f32 0.5, %v4200_v51  ;;  %v1694_v35 = vmul.f32 %v1622_v38, %v1406_v48  ;;  %2374 = vmatprep.mubr.bf16.mxu1 %v1766_v29 }
 0x2a1   :  { %v3183_v32 = vpop.eup %3182  ;;  %v1393_v52 = vmul.f32 0.5, %v4169_v47  ;;  %v1685_v34 = vmul.f32 %v1613_v2, %v4244_v31  ;;  %v1688_v20 = vmul.f32 %v1616_v7, %v1400_v62  ;;  %v1619_v12 = vadd.f32 1.0, %v3181_v19 }
 0x2a2   :  { %v1679_v44 = vmul.f32 %v4283_v49, %v1391_v53  ;;  %v1690_v28 = vmul.f32 %v1618_v43, %v1402_v46  ;;  %v1621_v9 = vadd.f32 1.0, %v3183_v32  ;;  %v1615_v55 = vadd.f32 1.0, %v3177_v0 }
 0x2a3   :  { %v1681_v30 = vmul.f32 %v1609_v60, %v1393_v52  ;;  %v1768_v57 = vpack.c.bf16 %v1692_v50, %v1688_v20  ;;  %v1617_v4 = vadd.f32 1.0, %v3179_v40  ;;  %v1403_v14 = vmul.f32 0.5, %v4235_v63 }
 0x2a4   :  { %v3185_v24 = vpop.eup %3184  ;;  %v1763_v33 = vpack.c.bf16 %v1683_v58, %v1679_v44  ;;  %v1770_v16 = vpack.c.bf16 %v1694_v35, %v1690_v28  ;;  %v1405_v47 = vmul.f32 0.5, %v4247_v5  ;;  %v1399_v25 = vmul.f32 0.5, %v4221_v1 }
 0x2a5   :  { %v1765_v15 = vpack.c.bf16 %v1685_v34, %v1681_v30  ;;  %v1624_v2 = vadd.f32 1.0, %v3185_v24  ;;  %v1401_v39 = vmul.f32 0.5, %v4229_v11  ;;  %v1691_v13 = vmul.f32 %v1619_v12, %v1403_v14 }
 0x2a6   :  { %v3187_v51 = vpop.eup %3186  ;;  %2252 = vmatmul.mubr.bf16.gmra.mxu0 %v1763_v33  ;;  %v1693_v27 = vmul.f32 %v1621_v9, %v1405_v47  ;;  %v1408_v23 = vmul.f32 0.5, %v4272_v21  ;;  %v1412_v63 = vmul.f32 0.5, %v4300_v56  ;;  %v1687_v41 = vmul.f32 %v1615_v55, %v1399_v25 }
 0x2a7   :  { %v3189_v31 = vpop.eup %3188  ;;  %2375 = vmatmul.mubr.bf16.gmra.mxu1 %v1765_v15  ;;  %2261 = vmatprep.mubr.bf16.mxu0 %v1768_v57  ;;  %v1626_v61 = vadd.f32 1.0, %v3187_v51  ;;  %v1689_v3 = vmul.f32 %v1617_v4, %v1401_v39  ;;  %v1410_v10 = vmul.f32 0.5, %v4275_v17  ;;  %v1414_v11 = vmul.f32 0.5, %v4303_v18 }
 0x2a8   :  { %v3191_v49 = vpop.eup %3190  ;;  %2384 = vmatprep.mubr.bf16.mxu1 %v1770_v16  ;;  %v1696_v22 = vmul.f32 %v1624_v2, %v1408_v23  ;;  %v1627_v43 = vadd.f32 1.0, %v3189_v31  ;;  %v1767_v48 = vpack.c.bf16 %v1691_v13, %v1687_v41  ;;  %v1411_v50 = vmul.f32 0.5, %v4280_v42  ;;  %v2516_v42 = vld [vmem:[%s4395_s4] sm:$0x3]  ;;  %s3316_s4 = smov [#allocation12]  }
 0x2a9   :  { %v3193_v7 = vpop.eup %3192  ;;  %v1628_v5 = vadd.f32 1.0, %v3191_v49  ;;  %v1769_v29 = vpack.c.bf16 %v1693_v27, %v1689_v3  ;;  %v1698_v21 = vmul.f32 %v1626_v61, %v1410_v10  ;;  %v1413_v17 = vmul.f32 0.5, %v4296_v45  ;;  %s2605_s15 = sshll.u32 %s3316_s4, 4  ;;  %s2606_s15 = int_to_ptr.vmem [resolvable:$true] %s2605_s15 }
 0x2aa   :  { %v3195_v8 = vpop.eup %3194  ;;  %v1629_v40 = vadd.f32 1.0, %v3193_v7  ;;  %v1407_v18 = vmul.f32 0.5, %v4287_v36  ;;  %v1699_v58 = vmul.f32 %v1627_v43, %v1411_v50  ;;  %v1409_v46 = vmul.f32 0.5, %v4292_v37  ;;  %s3280_s16 = scalar_lea.vmem %s2606_s15, 4608  ;;  %p3285_p7 = scmp.lt.s32.totalorder %s2606_s15, %s2606_s15 }
 0x2ab   :  { %v3197_v38 = vpop.eup %3196  ;;  %v1700_v1 = vmul.f32 %v1628_v5, %v1412_v63  ;;  %v1630_v26 = vadd.f32 1.0, %v3195_v8  ;;  %v4343_v44 = vrot.slane %v2516_v42, %v669_v59  ;;  %v4347_v30 = vrot.slane %v2516_v42, %v673_v6  ;;  %p3281_p6 = scmp.ne.s32.totalorder %s2606_s15, %s3280_s16  ;;  %p3286_p8 = scmp.lt.s32.totalorder %s3280_s16, %s3280_s16 }
 0x2ac   :  { %v3199_v0 = vpop.eup %3198  ;;  %v1623_v62 = vadd.f32 1.0, %v3197_v38  ;;  %v1701_v35 = vmul.f32 %v1629_v40, %v1413_v17 }
 0x2ad   :  { %v1702_v60 = vmul.f32 %v1630_v26, %v1414_v11  ;;  %v1772_v56 = vpack.c.bf16 %v1700_v1, %v1696_v22  ;;  %v1625_v19 = vadd.f32 1.0, %v3199_v0  ;;  %p3287_p9 = por %p3286_p8, %p3285_p7 }
 0x2ae   :  { %2262 = vmatmul.mubr.bf16.gmra.mxu0 %v1767_v48  ;;  %v1695_v32 = vmul.f32 %v1623_v62, %v1407_v18 }
 0x2af   :  { %2385 = vmatmul.mubr.bf16.gmra.mxu1 %v1769_v29  ;;  %2271 = vmatprep.mubr.bf16.mxu0 %v1772_v56  ;;  %v1774_v53 = vpack.c.bf16 %v1702_v60, %v1698_v21  ;;  %v1697_v52 = vmul.f32 %v1625_v19, %v1409_v46  ;;  %p3288_p10 = pnand %p3287_p9, %p3281_p6 }
 0x2b0   :  { %v1771_v34 = vpack.c.bf16 %v1699_v58, %v1695_v32 }
 0x2b1   :  { %2394 = vmatprep.mubr.bf16.mxu1 %v1774_v53  ;;  %v1773_v20 = vpack.c.bf16 %v1701_v35, %v1697_v52 }
 0x2b6   :  { %2272 = vmatmul.mubr.bf16.gmra.mxu0 %v1771_v34 }
 0x2b7   :  { %2395 = vmatmul.mubr.bf16.gmra.mxu1 %v1773_v20 }
 0x31c   :  { %v2193_v45 = vpop.f32.mrf.mxu0 }
 0x31d   :  { %v2316_v36 = vpop.f32.mrf.mxu1 }
 0x31e   :  { %v2317_v28 = vadd.f32 %v2316_v36, %v2193_v45  ;;  %v2195_v37 = vpop.f32.mrf.mxu0 }
 0x31f   :  { %v2318_v57 = vpop.f32.mrf.mxu1 }
 0x320   :  { %v2528_v24 = vadd.f32 %v4343_v44, %v2317_v28  ;;  %v2319_v12 = vadd.f32 %v2318_v57, %v2195_v37  ;;  %v2197_v9 = vpop.f32.mrf.mxu0 }
 0x321   :  { %v2320_v33 = vpop.f32.mrf.mxu1 }
 0x322   :  { %2564 = vst [vmem:[#allocation12] sm:$0xff] %v2528_v24  ;;  %v2529_v16 = vadd.f32 %v4347_v30, %v2319_v12  ;;  %v2321_v15 = vadd.f32 %v2320_v33, %v2197_v9  ;;  %v2199_v51 = vpop.f32.mrf.mxu0 }
 0x323   :  { %v2322_v59 = vpop.f32.mrf.mxu1 }
 0x324   :  { %2565 = vst [vmem:[#allocation12 + $0x8] sm:$0xff] %v2529_v16  ;;  %v2530_v55 = vadd.f32 %v4343_v44, %v2321_v15  ;;  %v2323_v4 = vadd.f32 %v2322_v59, %v2199_v51 }
 0x326   :  { %2566 = vst [vmem:[#allocation12 + $0x10] sm:$0xff] %v2530_v55  ;;  %v2531_v54 = vadd.f32 %v4347_v30, %v2323_v4 }
 0x328   :  { %2567 = vst [vmem:[#allocation12 + $0x18] sm:$0xff] %v2531_v54 }
 0x32c   :  { %v2203_v6 = vpop.f32.mrf.mxu0 }
 0x32d   :  { %v2326_v14 = vpop.f32.mrf.mxu1 }
 0x32e   :  { %v2327_v47 = vadd.f32 %v2326_v14, %v2203_v6  ;;  %v2205_v31 = vpop.f32.mrf.mxu0 }
 0x32f   :  { %v2328_v2 = vpop.f32.mrf.mxu1 }
 0x330   :  { %v2532_v49 = vadd.f32 %v4343_v44, %v2327_v47  ;;  %v2329_v25 = vadd.f32 %v2328_v2, %v2205_v31  ;;  %v2207_v39 = vpop.f32.mrf.mxu0 }
 0x331   :  { %v2330_v13 = vpop.f32.mrf.mxu1 }
 0x332   :  { %2568 = vst [vmem:[#allocation12 + $0x20] sm:$0xff] %v2532_v49  ;;  %v2533_v27 = vadd.f32 %v4347_v30, %v2329_v25  ;;  %v2331_v7 = vadd.f32 %v2330_v13, %v2207_v39  ;;  %v2209_v23 = vpop.f32.mrf.mxu0 }
 0x333   :  { %v2332_v61 = vpop.f32.mrf.mxu1 }
 0x334   :  { %2569 = vst [vmem:[#allocation12 + $0x28] sm:$0xff] %v2533_v27  ;;  %v2534_v63 = vadd.f32 %v4343_v44, %v2331_v7  ;;  %v2333_v5 = vadd.f32 %v2332_v61, %v2209_v23 }
 0x336   :  { %2570 = vst [vmem:[#allocation12 + $0x30] sm:$0xff] %v2534_v63  ;;  %v2535_v8 = vadd.f32 %v4347_v30, %v2333_v5 }
 0x338   :  { %2571 = vst [vmem:[#allocation12 + $0x38] sm:$0xff] %v2535_v8  ;;  %v2213_v41 = vpop.f32.mrf.mxu0 }
 0x339   :  { %v2336_v3 = vpop.f32.mrf.mxu1 }
 0x33a   :  { %v2337_v10 = vadd.f32 %v2336_v3, %v2213_v41  ;;  %v2215_v38 = vpop.f32.mrf.mxu0 }
 0x33b   :  { %v2338_v22 = vpop.f32.mrf.mxu1 }
 0x33c   :  { %v2536_v1 = vadd.f32 %v4343_v44, %v2337_v10  ;;  %v2339_v11 = vadd.f32 %v2338_v22, %v2215_v38  ;;  %v2217_v26 = vpop.f32.mrf.mxu0 }
 0x33d   :  { %v2340_v0 = vpop.f32.mrf.mxu1 }
 0x33e   :  { %2572 = vst [vmem:[#allocation12 + $0x40] sm:$0xff] %v2536_v1  ;;  %v2537_v43 = vadd.f32 %v4347_v30, %v2339_v11  ;;  %v2341_v48 = vadd.f32 %v2340_v0, %v2217_v26  ;;  %v2219_v29 = vpop.f32.mrf.mxu0 }
 0x33f   :  { %v2342_v21 = vpop.f32.mrf.mxu1 }
 0x340   :  { %2573 = vst [vmem:[#allocation12 + $0x48] sm:$0xff] %v2537_v43  ;;  %v2538_v40 = vadd.f32 %v4343_v44, %v2341_v48  ;;  %v2343_v60 = vadd.f32 %v2342_v21, %v2219_v29 }
 0x342   :  { %2574 = vst [vmem:[#allocation12 + $0x50] sm:$0xff] %v2538_v40  ;;  %v2539_v56 = vadd.f32 %v4347_v30, %v2343_v60 }
 0x344   :  { %2575 = vst [vmem:[#allocation12 + $0x58] sm:$0xff] %v2539_v56  ;;  %v2223_v62 = vpop.f32.mrf.mxu0 }
 0x346   :  { %v2225_v50 = vpop.f32.mrf.mxu0 }
 0x347   :  { %v2346_v19 = vpop.f32.mrf.mxu1 }
 0x348   :  { %v2347_v17 = vadd.f32 %v2346_v19, %v2223_v62  ;;  %v2227_v53 = vpop.f32.mrf.mxu0 }
 0x349   :  { %v2348_v18 = vpop.f32.mrf.mxu1 }
 0x34a   :  { %v2540_v58 = vadd.f32 %v4343_v44, %v2347_v17  ;;  %v2349_v46 = vadd.f32 %v2348_v18, %v2225_v50  ;;  %v2229_v32 = vpop.f32.mrf.mxu0 }
 0x34b   :  { %v2350_v35 = vpop.f32.mrf.mxu1 }
 0x34c   :  { %2576 = vst [vmem:[#allocation12 + $0x60] sm:$0xff] %v2540_v58  ;;  %v2541_v52 = vadd.f32 %v4347_v30, %v2349_v46  ;;  %v2351_v34 = vadd.f32 %v2350_v35, %v2227_v53 }
 0x34d   :  { %v2352_v20 = vpop.f32.mrf.mxu1 }
 0x34e   :  { %2577 = vst [vmem:[#allocation12 + $0x68] sm:$0xff] %v2541_v52  ;;  %v2542_v42 = vadd.f32 %v4343_v44, %v2351_v34  ;;  %v2353_v45 = vadd.f32 %v2352_v20, %v2229_v32 }
 0x350   :  { %2578 = vst [vmem:[#allocation12 + $0x70] sm:$0xff] %v2542_v42  ;;  %v2543_v36 = vadd.f32 %v4347_v30, %v2353_v45 }
 0x352   :  { %2579 = vst [vmem:[#allocation12 + $0x78] sm:$0xff] %v2543_v36  ;;  %v2233_v28 = vpop.f32.mrf.mxu0  ;;  %v2356_v37 = vpop.f32.mrf.mxu1 }
 0x353   :  { %v2357_v57 = vadd.f32 %v2356_v37, %v2233_v28 }
 0x354   :  { %v2235_v24 = vpop.f32.mrf.mxu0  ;;  %v2358_v12 = vpop.f32.mrf.mxu1 }
 0x355   :  { %v2544_v9 = vadd.f32 %v4343_v44, %v2357_v57  ;;  %v2359_v33 = vadd.f32 %v2358_v12, %v2235_v24 }
 0x356   :  { %v2237_v16 = vpop.f32.mrf.mxu0  ;;  %v2360_v15 = vpop.f32.mrf.mxu1 }
 0x357   :  { %2580 = vst [vmem:[#allocation12 + $0x80] sm:$0xff] %v2544_v9  ;;  %v2545_v51 = vadd.f32 %v4347_v30, %v2359_v33  ;;  %v2361_v59 = vadd.f32 %v2360_v15, %v2237_v16 }
 0x358   :  { %v2239_v55 = vpop.f32.mrf.mxu0  ;;  %v2362_v4 = vpop.f32.mrf.mxu1 }
 0x359   :  { %2581 = vst [vmem:[#allocation12 + $0x88] sm:$0xff] %v2545_v51  ;;  %v2546_v54 = vadd.f32 %v4343_v44, %v2361_v59  ;;  %v2363_v6 = vadd.f32 %v2362_v4, %v2239_v55 }
 0x35b   :  { %2582 = vst [vmem:[#allocation12 + $0x90] sm:$0xff] %v2546_v54  ;;  %v2547_v14 = vadd.f32 %v4347_v30, %v2363_v6 }
 0x35d   :  { %2583 = vst [vmem:[#allocation12 + $0x98] sm:$0xff] %v2547_v14 }
 0x35e   :  { %v2243_v47 = vpop.f32.mrf.mxu0 }
 0x35f   :  { %v2366_v31 = vpop.f32.mrf.mxu1 }
 0x360   :  { %v2367_v2 = vadd.f32 %v2366_v31, %v2243_v47  ;;  %v2245_v49 = vpop.f32.mrf.mxu0 }
 0x361   :  { %v2368_v25 = vpop.f32.mrf.mxu1 }
 0x362   :  { %v2548_v39 = vadd.f32 %v4343_v44, %v2367_v2  ;;  %v2369_v13 = vadd.f32 %v2368_v25, %v2245_v49  ;;  %v2247_v27 = vpop.f32.mrf.mxu0 }
 0x363   :  { %v2370_v7 = vpop.f32.mrf.mxu1 }
 0x364   :  { %2584 = vst [vmem:[#allocation12 + $0xa0] sm:$0xff] %v2548_v39  ;;  %v2549_v23 = vadd.f32 %v4347_v30, %v2369_v13  ;;  %v2371_v61 = vadd.f32 %v2370_v7, %v2247_v27  ;;  %v2249_v63 = vpop.f32.mrf.mxu0 }
 0x365   :  { %v2372_v5 = vpop.f32.mrf.mxu1 }
 0x366   :  { %2585 = vst [vmem:[#allocation12 + $0xa8] sm:$0xff] %v2549_v23  ;;  %v2550_v8 = vadd.f32 %v4343_v44, %v2371_v61  ;;  %v2373_v41 = vadd.f32 %v2372_v5, %v2249_v63  ;;  %v2253_v3 = vpop.f32.mrf.mxu0 }
 0x367   :  { %v2376_v10 = vpop.f32.mrf.mxu1 }
 0x368   :  { %2586 = vst [vmem:[#allocation12 + $0xb0] sm:$0xff] %v2550_v8  ;;  %v2551_v38 = vadd.f32 %v4347_v30, %v2373_v41  ;;  %v2377_v22 = vadd.f32 %v2376_v10, %v2253_v3  ;;  %v2255_v1 = vpop.f32.mrf.mxu0 }
 0x369   :  { %v2378_v11 = vpop.f32.mrf.mxu1 }
 0x36a   :  { %2587 = vst [vmem:[#allocation12 + $0xb8] sm:$0xff] %v2551_v38  ;;  %v2552_v26 = vadd.f32 %v4343_v44, %v2377_v22  ;;  %v2379_v0 = vadd.f32 %v2378_v11, %v2255_v1  ;;  %v2257_v43 = vpop.f32.mrf.mxu0 }
 0x36b   :  { %v2380_v48 = vpop.f32.mrf.mxu1 }
 0x36c   :  { %2588 = vst [vmem:[#allocation12 + $0xc0] sm:$0xff] %v2552_v26  ;;  %v2553_v29 = vadd.f32 %v4347_v30, %v2379_v0  ;;  %v2381_v21 = vadd.f32 %v2380_v48, %v2257_v43  ;;  %v2259_v40 = vpop.f32.mrf.mxu0 }
 0x36d   :  { %v2382_v60 = vpop.f32.mrf.mxu1 }
 0x36e   :  { %2589 = vst [vmem:[#allocation12 + $0xc8] sm:$0xff] %v2553_v29  ;;  %v2554_v56 = vadd.f32 %v4343_v44, %v2381_v21  ;;  %v2383_v62 = vadd.f32 %v2382_v60, %v2259_v40  ;;  %v2263_v50 = vpop.f32.mrf.mxu0 }
 0x36f   :  { %v2386_v19 = vpop.f32.mrf.mxu1 }
 0x370   :  { %2590 = vst [vmem:[#allocation12 + $0xd0] sm:$0xff] %v2554_v56  ;;  %v2555_v17 = vadd.f32 %v4347_v30, %v2383_v62  ;;  %v2387_v53 = vadd.f32 %v2386_v19, %v2263_v50  ;;  %v2265_v18 = vpop.f32.mrf.mxu0 }
 0x371   :  { %v2388_v58 = vpop.f32.mrf.mxu1 }
 0x372   :  { %2591 = vst [vmem:[#allocation12 + $0xd8] sm:$0xff] %v2555_v17  ;;  %v2556_v46 = vadd.f32 %v4343_v44, %v2387_v53  ;;  %v2389_v35 = vadd.f32 %v2388_v58, %v2265_v18  ;;  %v2267_v32 = vpop.f32.mrf.mxu0 }
 0x373   :  { %v2390_v52 = vpop.f32.mrf.mxu1 }
 0x374   :  { %2592 = vst [vmem:[#allocation12 + $0xe0] sm:$0xff] %v2556_v46  ;;  %v2557_v34 = vadd.f32 %v4347_v30, %v2389_v35  ;;  %v2391_v20 = vadd.f32 %v2390_v52, %v2267_v32  ;;  %v2269_v42 = vpop.f32.mrf.mxu0 }
 0x375   :  { %v2392_v45 = vpop.f32.mrf.mxu1 }
 0x376   :  { %2593 = vst [vmem:[#allocation12 + $0xe8] sm:$0xff] %v2557_v34  ;;  %v2558_v36 = vadd.f32 %v4343_v44, %v2391_v20  ;;  %v2393_v28 = vadd.f32 %v2392_v45, %v2269_v42  ;;  %v2273_v37 = vpop.f32.mrf.mxu0 }
 0x377   :  { %v2396_v57 = vpop.f32.mrf.mxu1 }
 0x378   :  { %2594 = vst [vmem:[#allocation12 + $0xf0] sm:$0xff] %v2558_v36  ;;  %v2559_v24 = vadd.f32 %v4347_v30, %v2393_v28  ;;  %v2397_v12 = vadd.f32 %v2396_v57, %v2273_v37  ;;  %v2275_v9 = vpop.f32.mrf.mxu0 }
 0x379   :  { %v2398_v33 = vpop.f32.mrf.mxu1 }
 0x37a   :  { %2595 = vst [vmem:[#allocation12 + $0xf8] sm:$0xff] %v2559_v24  ;;  %v2560_v16 = vadd.f32 %v4343_v44, %v2397_v12  ;;  %v2399_v15 = vadd.f32 %v2398_v33, %v2275_v9  ;;  %v2277_v51 = vpop.f32.mrf.mxu0 }
 0x37b   :  { %v2400_v59 = vpop.f32.mrf.mxu1 }
 0x37c   :  { %2596 = vst [vmem:[#allocation12 + $0x100] sm:$0xff] %v2560_v16  ;;  %v2561_v55 = vadd.f32 %v4347_v30, %v2399_v15  ;;  %v2401_v4 = vadd.f32 %v2400_v59, %v2277_v51  ;;  %v2279_v54 = vpop.f32.mrf.mxu0 }
 0x37d   :  { %v2402_v6 = vpop.f32.mrf.mxu1 }
 0x37e   :  { %2597 = vst [vmem:[#allocation12 + $0x108] sm:$0xff] %v2561_v55  ;;  %v2562_v14 = vadd.f32 %v4343_v44, %v2401_v4  ;;  %v2403_v47 = vadd.f32 %v2402_v6, %v2279_v54 }
 0x380   :  { %2598 = vst [vmem:[#allocation12 + $0x110] sm:$0xff] %v2562_v14  ;;  %v2563_v31 = vadd.f32 %v4347_v30, %v2403_v47 }
 0x382   :  { %2599 = vst [vmem:[#allocation12 + $0x118] sm:$0xff] %v2563_v31 }
 0x383   :  { %3291 = shalt.err (!%p3288_p10)
}
 0x384   :  { %2611 = dma.vmem_to_hbm [thread:$0]  %s2606_s15, 4608, %s4396_s5, [#allocation6], %s3309_s21, %s3309_s21, %s3310_s22  }
 0x385   :  { %3306 = dma.done.wait [#allocation6], 4608  }
 0x386   :  { %3307 = vsyncadd [#allocation6], 4294962688 }
 0x387   :  { %2615 = vsyncpa [#allocation5], 1 }
 0x388   :  { %2616 = vsyncpa [#allocation8], 1 }
 0x389   :  { %2617 = vsyncpa [#allocation11], 1 }
 0x38a   :  { %2618 = vsyncpa [#allocation6], 1 }

</bundles_post_ra>
